<compile_context>
chip_gen: v6e
topology: v6e:2x2x1
jax: 0.10.0
libtpu: 0.0.40
codegen_flags: <defaults>
</compile_context>

<pallas_src>
import functools

import jax
import jax.numpy as jnp
from jax.experimental import pallas as pl
from jax.experimental.pallas import tpu as pltpu

K = 5
L0, L1, L2, L3 = 256, 252, 248, 244          # input / per-layer valid output lengths
C0, C1, C2, C3 = 1, 2, 2, 2                  # channel counts
NUM_CLASSES = 10

LANES = 256        # per-channel lane width (out_len zero-padded up to it)
FC_LANES = 128     # lane-dense logits tile; sliced back to NUM_CLASSES in the wrapper
SUB_MAX = 128      # max rows per inner sub-batch chunk (bounds vreg live ranges)


def _round_up(n, m):
    return ((n + m - 1) // m) * m


# ---------------------------------------------------------------------------
# kernel
# ---------------------------------------------------------------------------
def mlcn_kernel(x_ref, w1_ref, b1_ref, w2_ref, b2_ref, w3_ref, b3_ref,
                wfc_ref, bfc_ref, out_ref, *, sub):
    """One batch tile.  x_ref: (bt, 256); weights are banded matrices (see prep)."""
    bt = x_ref.shape[0]
    n_sub = bt // sub

    def forward_chunk(x):
        # Each LC layer = one banded (sub, Cin*256) @ (Cin*256, Cout*256) MXU matmul.
        h1 = jnp.dot(x, w1_ref[...], preferred_element_type=jnp.float32) + b1_ref[...]
        h1 = jnp.maximum(h1, 0.0)                                   # relu
        h2 = jnp.dot(h1, w2_ref[...], preferred_element_type=jnp.float32) + b2_ref[...]
        h3 = jax.nn.sigmoid(
            jnp.dot(h2, w3_ref[...], preferred_element_type=jnp.float32) + b3_ref[...])
        # FC over both channels at once: (sub, 512) @ (512, 128), lane-dense output.
        return jnp.dot(h3, wfc_ref[...], preferred_element_type=jnp.float32) + bfc_ref[...]

    if n_sub == 1:
        out_ref[...] = forward_chunk(x_ref[...])
    else:
        # Inner loop over sub-batch chunks keeps the live set per iteration small
        # (a fori_loop body is a real loop boundary, unlike a static Python loop).
        def body(s, carry):
            row = pl.multiple_of(s * sub, sub)
            out_ref[pl.ds(row, sub), :] = forward_chunk(x_ref[pl.ds(row, sub), :])
            return carry

        jax.lax.fori_loop(0, n_sub, body, 0)


# ---------------------------------------------------------------------------
# parameter prep (torch layout -> banded matmul layout)
# ---------------------------------------------------------------------------
def _prep_lc_banded(w, b):
    """Torch LC params (O, C, out_len, K), (O, out_len) ->
       W: (C*LANES, O*LANES) banded matrix with W[c*LANES+i+k, o*LANES+i] = w[o,c,i,k]
       B: (1, O*LANES) with B[0, o*LANES+i] = C * b[o, i]   (PyTorch adds the bias once
          per input channel before the channel sum; biases are zero-init so this is
          numerically moot but kept for fidelity).
       Positions i >= out_len stay exactly zero (padding invariant)."""
    o, c, l, kk = w.shape
    W = jnp.zeros((c * LANES, o * LANES), jnp.float32)
    idx = jnp.arange(l)
    for oc in range(o):
        for cc in range(c):
            for k in range(kk):
                W = W.at[cc * LANES + idx + k, oc * LANES + idx].set(w[oc, cc, :, k])
    B = jnp.zeros((1, o * LANES), jnp.float32)
    for oc in range(o):
        B = B.at[0, oc * LANES: oc * LANES + l].set(float(c) * b[oc])
    return W, B


def _prep_fc(wfc, bfc):
    """Torch fc weight (10, 2*244) -> (C3*LANES, FC_LANES).  torch .view(B,-1) on
    (B, C3, L3) flattens channel-major, so flat[:, c*244+i] = h3[:, c, i].
    Rows i >= L3 (the sigmoid(0)=0.5 tail) and cols >= NUM_CLASSES stay zero."""
    w = wfc.reshape(NUM_CLASSES, C3, L3)
    W = jnp.zeros((C3 * LANES, FC_LANES), jnp.float32)
    for c in range(C3):
        W = W.at[c * LANES: c * LANES + L3, :NUM_CLASSES].set(jnp.transpose(w[:, c, :]))
    B = jnp.zeros((1, FC_LANES), jnp.float32).at[0, :NUM_CLASSES].set(bfc)
    return W, B


def _choose_tiles(batch, batch_tile):
    """Pick (padded_batch, batch_tile, sub_chunk).  Tiles are sublane(8)-aligned, the
    grid gets >=2 steps whenever the batch allows (v7x megacore), and the batch tile
    is a multiple of the inner sub-chunk."""
    b8 = _round_up(max(batch, 1), 8)
    bt = min(batch_tile, _round_up(-(-b8 // 2), 8))   # aim for >= 2 grid steps
    bt = max(bt, 8)
    sub = min(SUB_MAX, bt)
    bt = _round_up(bt, sub)
    bpad = _round_up(b8, bt)
    return bpad, bt, sub


# ---------------------------------------------------------------------------
# wrapper
# ---------------------------------------------------------------------------
def mlcn_forward(x, params, *, batch_tile=512):
    """x: (B, 1, 256) f32; params in torch layout (see init_params)."""
    w1, b1, w2, b2, w3, b3, wfc, bfc = params
    batch = x.shape[0]
    bpad, bt, sub = _choose_tiles(batch, batch_tile)

    # batch on the sublane axis
    xp = jnp.zeros((bpad, LANES), jnp.float32).at[:batch].set(x.reshape(batch, LANES))

    w1p, b1p = _prep_lc_banded(w1, b1)      # (256, 512), (1, 512)
    w2p, b2p = _prep_lc_banded(w2, b2)      # (512, 512), (1, 512)
    w3p, b3p = _prep_lc_banded(w3, b3)      # (512, 512), (1, 512)
    wfcp, bfcp = _prep_fc(wfc, bfc)         # (512, 128), (1, 128)

    const = lambda a: pl.BlockSpec(a.shape, lambda i: (0, 0))   # VMEM-resident weights

    out = pl.pallas_call(
        functools.partial(mlcn_kernel, sub=sub),
        out_shape=jax.ShapeDtypeStruct((bpad, FC_LANES), jnp.float32),
        grid_spec=pltpu.PrefetchScalarGridSpec(
            num_scalar_prefetch=0,
            grid=(bpad // bt,),
            in_specs=[
                pl.BlockSpec((bt, LANES), lambda i: (i, 0)),    # activations (tiled)
                const(w1p), const(b1p),
                const(w2p), const(b2p),
                const(w3p), const(b3p),
                const(wfcp), const(bfcp),
            ],
            out_specs=pl.BlockSpec((bt, FC_LANES), lambda i: (i, 0)),
        ),
        compiler_params=pltpu.CompilerParams(
            dimension_semantics=("parallel",),        # shard batch across TCs on v7x
            vmem_limit_bytes=32 * 1024 * 1024,
        ),
    )(xp, w1p, b1p, w2p, b2p, w3p, b3p, wfcp, bfcp)
    return out[:batch, :NUM_CLASSES]


# ---------------------------------------------------------------------------
# init (torch layout) + pure-JAX reference
# ---------------------------------------------------------------------------
def init_params(key):
    """Deterministic kaiming-uniform-style init (the module's 'effective' mode)."""
    def kaiming_uniform(k, shape, fan_in):
        bound = jnp.sqrt(2.0) * jnp.sqrt(3.0 / fan_in)   # gain(relu) * sqrt(3/fan_in)
        return jax.random.uniform(k, shape, jnp.float32, -bound, bound)

    k1, k2, k3, k4 = jax.random.split(key, 4)
    w1 = kaiming_uniform(k1, (C1, C0, L1, K), C0 * L1 * K)
    b1 = jnp.zeros((C1, L1), jnp.float32)
    w2 = kaiming_uniform(k2, (C2, C1, L2, K), C1 * L2 * K)
    b2 = jnp.zeros((C2, L2), jnp.float32)
    w3 = kaiming_uniform(k3, (C3, C2, L3, K), C2 * L3 * K)
    b3 = jnp.zeros((C3, L3), jnp.float32)
    wfc = kaiming_uniform(k4, (NUM_CLASSES, C3 * L3), C3 * L3)
    bfc = jnp.zeros((NUM_CLASSES,), jnp.float32)
    return (w1, b1, w2, b2, w3, b3, wfc, bfc)


def _local_conv_ref(x, w, b, out_len):
    """Pure-JAX unshared 1D conv matching the PyTorch loop (incl. the cin*bias quirk)."""
    cin = x.shape[1]
    acc = jnp.zeros((x.shape[0], w.shape[0], out_len), jnp.float32)
    for k in range(K):
        acc = acc + jnp.sum(x[:, None, :, k:k + out_len] * w[None, :, :, :, k], axis=2)
    return acc + cin * b[None, :, :]


def reference_forward(x, params):
    w1, b1, w2, b2, w3, b3, wfc, bfc = params
    h1 = jnp.maximum(_local_conv_ref(x, w1, b1, L1), 0.0)
    h2 = _local_conv_ref(h1, w2, b2, L2)
    h3 = jax.nn.sigmoid(_local_conv_ref(h2, w3, b3, L3))
    flat = h3.reshape(h3.shape[0], -1)                       # (B, 488), channel-major
    return flat @ wfc.T + bfc[None, :]


if __name__ == "__main__":
    key = jax.random.PRNGKey(0)
    pkey, xkey, xkey2 = jax.random.split(key, 3)
    params = init_params(pkey)

    fwd = jax.jit(mlcn_forward)

    # small smoke test (grid=1, single chunk)
    x = jax.random.normal(xkey, (2, C0, L0), jnp.float32)
    out = jax.block_until_ready(fwd(x, params))
    ref = reference_forward(x, params)
    assert out.shape == (2, NUM_CLASSES), out.shape
    err = jnp.max(jnp.abs(out - ref))
    assert jnp.allclose(out, ref, atol=1e-2, rtol=1e-2), f"max abs err {err}"

    # larger batch: exercises the multi-step grid (megacore path) and the inner
    # sub-batch fori_loop inside the kernel.
    x2 = jax.random.normal(xkey2, (288, C0, L0), jnp.float32)
    out2 = jax.block_until_ready(fwd(x2, params))
    ref2 = reference_forward(x2, params)
    err2 = jnp.max(jnp.abs(out2 - ref2))
    assert out2.shape == (288, NUM_CLASSES), out2.shape
    assert jnp.allclose(out2, ref2, atol=1e-2, rtol=1e-2), f"max abs err {err2}"

    print("KERNEL_OK")
</pallas_src>

<mosaic_0001>
module attributes {stable_mosaic.version = 11 : i64} {
  func.func @mlcn_kernel(%arg0: i32, %arg1: memref<8x256xf32, #tpu.memory_space<vmem>>, %arg2: memref<256x512xf32, #tpu.memory_space<vmem>>, %arg3: memref<1x512xf32, #tpu.memory_space<vmem>>, %arg4: memref<512x512xf32, #tpu.memory_space<vmem>>, %arg5: memref<1x512xf32, #tpu.memory_space<vmem>>, %arg6: memref<512x512xf32, #tpu.memory_space<vmem>>, %arg7: memref<1x512xf32, #tpu.memory_space<vmem>>, %arg8: memref<512x128xf32, #tpu.memory_space<vmem>>, %arg9: memref<1x128xf32, #tpu.memory_space<vmem>>, %arg10: memref<8x128xf32, #tpu.memory_space<vmem>>) attributes {dimension_semantics = [#tpu.dimension_semantics<parallel>], iteration_bounds = array<i64: 1>, scalar_prefetch = 0 : i64, scratch_operands = 0 : i64, tpu.core_type = #tpu.core_type<tc>, window_params = [{transform_indices = @transform_0, window_bounds = array<i64: 8, 256>}, {pipeline_mode = #tpu.pipeline_mode<synchronous>, transform_indices = @transform_1, window_bounds = array<i64: 256, 512>}, {pipeline_mode = #tpu.pipeline_mode<synchronous>, transform_indices = @transform_2, window_bounds = array<i64: 1, 512>}, {pipeline_mode = #tpu.pipeline_mode<synchronous>, transform_indices = @transform_3, window_bounds = array<i64: 512, 512>}, {pipeline_mode = #tpu.pipeline_mode<synchronous>, transform_indices = @transform_4, window_bounds = array<i64: 1, 512>}, {pipeline_mode = #tpu.pipeline_mode<synchronous>, transform_indices = @transform_5, window_bounds = array<i64: 512, 512>}, {pipeline_mode = #tpu.pipeline_mode<synchronous>, transform_indices = @transform_6, window_bounds = array<i64: 1, 512>}, {pipeline_mode = #tpu.pipeline_mode<synchronous>, transform_indices = @transform_7, window_bounds = array<i64: 512, 128>}, {pipeline_mode = #tpu.pipeline_mode<synchronous>, transform_indices = @transform_8, window_bounds = array<i64: 1, 128>}, {transform_indices = @transform_9, window_bounds = array<i64: 8, 128>}]} {
    %c0 = arith.constant 0 : index
    %c0_0 = arith.constant 0 : index
    %0 = vector.load %arg1[%c0, %c0_0] : memref<8x256xf32, #tpu.memory_space<vmem>>, vector<8x256xf32>
    %c0_1 = arith.constant 0 : index
    %c0_2 = arith.constant 0 : index
    %1 = vector.load %arg2[%c0_1, %c0_2] : memref<256x512xf32, #tpu.memory_space<vmem>>, vector<256x512xf32>
    %cst = arith.constant dense<0.000000e+00> : vector<8x512xf32>
    %2 = tpu.matmul %0, %1, %cst {dimension_numbers = #tpu.dot_dimension_numbers<[1], [0], [0], [1], [0, 0, 1, 1], [], []>} : vector<8x256xf32>, vector<256x512xf32>, vector<8x512xf32> -> vector<8x512xf32>
    %c0_3 = arith.constant 0 : index
    %c0_4 = arith.constant 0 : index
    %3 = vector.load %arg3[%c0_3, %c0_4] : memref<1x512xf32, #tpu.memory_space<vmem>>, vector<1x512xf32>
    %4 = vector.broadcast %3 : vector<1x512xf32> to vector<8x512xf32>
    %5 = arith.addf %2, %4 : vector<8x512xf32>
    %cst_5 = arith.constant 0.000000e+00 : f32
    %6 = vector.broadcast %cst_5 : f32 to vector<8x512xf32>
    %7 = arith.maximumf %5, %6 : vector<8x512xf32>
    %c0_6 = arith.constant 0 : index
    %c0_7 = arith.constant 0 : index
    %8 = vector.load %arg4[%c0_6, %c0_7] : memref<512x512xf32, #tpu.memory_space<vmem>>, vector<512x512xf32>
    %cst_8 = arith.constant dense<0.000000e+00> : vector<8x512xf32>
    %9 = tpu.matmul %7, %8, %cst_8 {dimension_numbers = #tpu.dot_dimension_numbers<[1], [0], [0], [1], [0, 0, 1, 1], [], []>} : vector<8x512xf32>, vector<512x512xf32>, vector<8x512xf32> -> vector<8x512xf32>
    %c0_9 = arith.constant 0 : index
    %c0_10 = arith.constant 0 : index
    %10 = vector.load %arg5[%c0_9, %c0_10] : memref<1x512xf32, #tpu.memory_space<vmem>>, vector<1x512xf32>
    %11 = vector.broadcast %10 : vector<1x512xf32> to vector<8x512xf32>
    %12 = arith.addf %9, %11 : vector<8x512xf32>
    %c0_11 = arith.constant 0 : index
    %c0_12 = arith.constant 0 : index
    %13 = vector.load %arg6[%c0_11, %c0_12] : memref<512x512xf32, #tpu.memory_space<vmem>>, vector<512x512xf32>
    %cst_13 = arith.constant dense<0.000000e+00> : vector<8x512xf32>
    %14 = tpu.matmul %12, %13, %cst_13 {dimension_numbers = #tpu.dot_dimension_numbers<[1], [0], [0], [1], [0, 0, 1, 1], [], []>} : vector<8x512xf32>, vector<512x512xf32>, vector<8x512xf32> -> vector<8x512xf32>
    %c0_14 = arith.constant 0 : index
    %c0_15 = arith.constant 0 : index
    %15 = vector.load %arg7[%c0_14, %c0_15] : memref<1x512xf32, #tpu.memory_space<vmem>>, vector<1x512xf32>
    %16 = vector.broadcast %15 : vector<1x512xf32> to vector<8x512xf32>
    %17 = arith.addf %14, %16 : vector<8x512xf32>
    %18 = arith.negf %17 : vector<8x512xf32>
    %19 = math.exp %18 : vector<8x512xf32>
    %cst_16 = arith.constant 1.000000e+00 : f32
    %20 = vector.broadcast %cst_16 : f32 to vector<8x512xf32>
    %21 = arith.addf %20, %19 : vector<8x512xf32>
    %22 = arith.divf %20, %21 : vector<8x512xf32>
    %c0_17 = arith.constant 0 : index
    %c0_18 = arith.constant 0 : index
    %23 = vector.load %arg8[%c0_17, %c0_18] : memref<512x128xf32, #tpu.memory_space<vmem>>, vector<512x128xf32>
    %cst_19 = arith.constant dense<0.000000e+00> : vector<8x128xf32>
    %24 = tpu.matmul %22, %23, %cst_19 {dimension_numbers = #tpu.dot_dimension_numbers<[1], [0], [0], [1], [0, 0, 1, 1], [], []>} : vector<8x512xf32>, vector<512x128xf32>, vector<8x128xf32> -> vector<8x128xf32>
    %c0_20 = arith.constant 0 : index
    %c0_21 = arith.constant 0 : index
    %25 = vector.load %arg9[%c0_20, %c0_21] : memref<1x128xf32, #tpu.memory_space<vmem>>, vector<1x128xf32>
    %26 = vector.broadcast %25 : vector<1x128xf32> to vector<8x128xf32>
    %27 = arith.addf %24, %26 : vector<8x128xf32>
    %c0_22 = arith.constant 0 : index
    %c0_23 = arith.constant 0 : index
    %28 = vector.load %arg10[%c0_22, %c0_23] : memref<8x128xf32, #tpu.memory_space<vmem>>, vector<8x128xf32>
    tpu.vector_store %arg10[%c0_22, %c0_23], %27 {strides = array<i32>} : memref<8x128xf32, #tpu.memory_space<vmem>>, vector<8x128xf32>,
    return
  }
  func.func @transform_0(%arg0: i32) -> (i32, i32) {
    %c0_i32 = arith.constant 0 : i32
    %c0_i32_0 = arith.constant 0 : i32
    return %arg0, %c0_i32 : i32, i32
  }
  func.func @transform_1(%arg0: i32) -> (i32, i32) {
    %c0_i32 = arith.constant 0 : i32
    %c0_i32_0 = arith.constant 0 : i32
    %c0_i32_1 = arith.constant 0 : i32
    return %c0_i32, %c0_i32_0 : i32, i32
  }
  func.func @transform_2(%arg0: i32) -> (i32, i32) {
    %c0_i32 = arith.constant 0 : i32
    %c0_i32_0 = arith.constant 0 : i32
    %c0_i32_1 = arith.constant 0 : i32
    return %c0_i32, %c0_i32_0 : i32, i32
  }
  func.func @transform_3(%arg0: i32) -> (i32, i32) {
    %c0_i32 = arith.constant 0 : i32
    %c0_i32_0 = arith.constant 0 : i32
    %c0_i32_1 = arith.constant 0 : i32
    return %c0_i32, %c0_i32_0 : i32, i32
  }
  func.func @transform_4(%arg0: i32) -> (i32, i32) {
    %c0_i32 = arith.constant 0 : i32
    %c0_i32_0 = arith.constant 0 : i32
    %c0_i32_1 = arith.constant 0 : i32
    return %c0_i32, %c0_i32_0 : i32, i32
  }
  func.func @transform_5(%arg0: i32) -> (i32, i32) {
    %c0_i32 = arith.constant 0 : i32
    %c0_i32_0 = arith.constant 0 : i32
    %c0_i32_1 = arith.constant 0 : i32
    return %c0_i32, %c0_i32_0 : i32, i32
  }
  func.func @transform_6(%arg0: i32) -> (i32, i32) {
    %c0_i32 = arith.constant 0 : i32
    %c0_i32_0 = arith.constant 0 : i32
    %c0_i32_1 = arith.constant 0 : i32
    return %c0_i32, %c0_i32_0 : i32, i32
  }
  func.func @transform_7(%arg0: i32) -> (i32, i32) {
    %c0_i32 = arith.constant 0 : i32
    %c0_i32_0 = arith.constant 0 : i32
    %c0_i32_1 = arith.constant 0 : i32
    return %c0_i32, %c0_i32_0 : i32, i32
  }
  func.func @transform_8(%arg0: i32) -> (i32, i32) {
    %c0_i32 = arith.constant 0 : i32
    %c0_i32_0 = arith.constant 0 : i32
    %c0_i32_1 = arith.constant 0 : i32
    return %c0_i32, %c0_i32_0 : i32, i32
  }
  func.func @transform_9(%arg0: i32) -> (i32, i32) {
    %c0_i32 = arith.constant 0 : i32
    %c0_i32_0 = arith.constant 0 : i32
    return %arg0, %c0_i32 : i32, i32
  }
}

</mosaic_0001>

<bundles_post_ra>
// kernel: mlcn_forward.1
= control target key start
LH: loop header
LB: loop body
LE: loop exit
PB: predicated region body
PF: predicated region fallthrough
CT: control target
= control target key end

     0   :  { %s4016_s1 = inlined_call_operand.vmem [shape: f32[256,512], index: 1, kind: input, shape index: {}]   ;;  %s4017_s0 = inlined_call_operand.vmem [shape: f32[8,256], index: 0, kind: input, shape index: {}]   ;;  %s4018_s3 = inlined_call_operand.vmem [shape: f32[512,512], index: 3, kind: input, shape index: {}]   ;;  %s4019_s2 = inlined_call_operand.vmem [shape: f32[1,512], index: 2, kind: input, shape index: {}]   ;;  %s4020_s5 = inlined_call_operand.vmem [shape: f32[512,512], index: 5, kind: input, shape index: {}]   ;;  %s4021_s4 = inlined_call_operand.vmem [shape: f32[1,512], index: 4, kind: input, shape index: {}]   ;;  %s4022_s7 = inlined_call_operand.vmem [shape: f32[512,128], index: 7, kind: input, shape index: {}]   ;;  %s4023_s6 = inlined_call_operand.vmem [shape: f32[1,512], index: 6, kind: input, shape index: {}]   ;;  %s4024_s8 = inlined_call_operand.vmem [shape: f32[1,128], index: 8, kind: input, shape index: {}]   ;;  %s4025_s9 = inlined_call_operand.vmem [shape: f32[8,128], index: 9, kind: output, shape index: {}]  }
   0x1   :  { %v95_v0 = vld [vmem:[%s4016_s1 + $0x1e8] sm:$0xff]  ;;  %v97_v1 = vld [vmem:[%s4016_s1 + $0x1f8] sm:$0xff]  ;;  %v94_v2 = vld [vmem:[%s4016_s1 + $0x1e0] sm:$0xff] }
   0x2   :  { %184 = vmatprep.subr.mxu0 %v95_v0  ;;  %255 = vmatprep.subr.mxu1 %v97_v1  ;;  %v96_v3 = vld [vmem:[%s4016_s1 + $0x1f0] sm:$0xff]  ;;  %v91_v4 = vld [vmem:[%s4016_s1 + $0x1c8] sm:$0xff]  ;;  %v93_v5 = vld [vmem:[%s4016_s1 + $0x1d8] sm:$0xff] }
   0x3   :  { %185 = vmatpush1.msra.mxu0 %v94_v2  ;;  %256 = vmatpush1.msra.mxu1 %v96_v3  ;;  %v90_v6 = vld [vmem:[%s4016_s1 + $0x1c0] sm:$0xff]  ;;  %v92_v7 = vld [vmem:[%s4016_s1 + $0x1d0] sm:$0xff]  ;;  %v87_v8 = vld [vmem:[%s4016_s1 + $0x1a8] sm:$0xff] }
   0x4   :  { %186 = vmatprep.subr.mxu0 %v91_v4  ;;  %257 = vmatprep.subr.mxu1 %v93_v5  ;;  %v89_v9 = vld [vmem:[%s4016_s1 + $0x1b8] sm:$0xff]  ;;  %v86_v10 = vld [vmem:[%s4016_s1 + $0x1a0] sm:$0xff]  ;;  %v88_v11 = vld [vmem:[%s4016_s1 + $0x1b0] sm:$0xff] }
   0x5   :  { %187 = vmatpush1.msra.mxu0 %v90_v6  ;;  %258 = vmatpush1.msra.mxu1 %v92_v7  ;;  %v83_v12 = vld [vmem:[%s4016_s1 + $0x188] sm:$0xff]  ;;  %v85_v13 = vld [vmem:[%s4016_s1 + $0x198] sm:$0xff]  ;;  %v82_v14 = vld [vmem:[%s4016_s1 + $0x180] sm:$0xff] }
   0x6   :  { %188 = vmatprep.subr.mxu0 %v87_v8  ;;  %259 = vmatprep.subr.mxu1 %v89_v9  ;;  %v84_v15 = vld [vmem:[%s4016_s1 + $0x190] sm:$0xff]  ;;  %v79_v16 = vld [vmem:[%s4016_s1 + $0x168] sm:$0xff]  ;;  %v81_v17 = vld [vmem:[%s4016_s1 + $0x178] sm:$0xff] }
   0x7   :  { %189 = vmatpush1.msra.mxu0 %v86_v10  ;;  %260 = vmatpush1.msra.mxu1 %v88_v11  ;;  %v78_v18 = vld [vmem:[%s4016_s1 + $0x160] sm:$0xff]  ;;  %v80_v19 = vld [vmem:[%s4016_s1 + $0x170] sm:$0xff]  ;;  %v75_v20 = vld [vmem:[%s4016_s1 + $0x148] sm:$0xff] }
   0x8   :  { %190 = vmatprep.subr.mxu0 %v83_v12  ;;  %261 = vmatprep.subr.mxu1 %v85_v13  ;;  %v77_v21 = vld [vmem:[%s4016_s1 + $0x158] sm:$0xff]  ;;  %v74_v22 = vld [vmem:[%s4016_s1 + $0x140] sm:$0xff]  ;;  %v76_v23 = vld [vmem:[%s4016_s1 + $0x150] sm:$0xff] }
   0x9   :  { %191 = vmatpush1.msra.mxu0 %v82_v14  ;;  %262 = vmatpush1.msra.mxu1 %v84_v15  ;;  %v71_v24 = vld [vmem:[%s4016_s1 + $0x128] sm:$0xff]  ;;  %v73_v25 = vld [vmem:[%s4016_s1 + $0x138] sm:$0xff]  ;;  %v70_v26 = vld [vmem:[%s4016_s1 + $0x120] sm:$0xff] }
   0xa   :  { %192 = vmatprep.subr.mxu0 %v79_v16  ;;  %263 = vmatprep.subr.mxu1 %v81_v17  ;;  %v72_v27 = vld [vmem:[%s4016_s1 + $0x130] sm:$0xff]  ;;  %v67_v28 = vld [vmem:[%s4016_s1 + $0x108] sm:$0xff]  ;;  %v69_v29 = vld [vmem:[%s4016_s1 + $0x118] sm:$0xff] }
   0xb   :  { %193 = vmatpush1.msra.mxu0 %v78_v18  ;;  %264 = vmatpush1.msra.mxu1 %v80_v19  ;;  %v66_v30 = vld [vmem:[%s4016_s1 + $0x100] sm:$0xff]  ;;  %v68_v31 = vld [vmem:[%s4016_s1 + $0x110] sm:$0xff]  ;;  %v63_v32 = vld [vmem:[%s4016_s1 + $0xe8] sm:$0xff] }
   0xc   :  { %194 = vmatprep.subr.mxu0 %v75_v20  ;;  %265 = vmatprep.subr.mxu1 %v77_v21  ;;  %v65_v33 = vld [vmem:[%s4016_s1 + $0xf8] sm:$0xff]  ;;  %v62_v34 = vld [vmem:[%s4016_s1 + $0xe0] sm:$0xff]  ;;  %v64_v35 = vld [vmem:[%s4016_s1 + $0xf0] sm:$0xff] }
   0xd   :  { %195 = vmatpush1.msra.mxu0 %v74_v22  ;;  %266 = vmatpush1.msra.mxu1 %v76_v23  ;;  %v59_v36 = vld [vmem:[%s4016_s1 + $0xc8] sm:$0xff]  ;;  %v61_v37 = vld [vmem:[%s4016_s1 + $0xd8] sm:$0xff]  ;;  %v58_v38 = vld [vmem:[%s4016_s1 + $0xc0] sm:$0xff] }
   0xe   :  { %196 = vmatprep.subr.mxu0 %v71_v24  ;;  %267 = vmatprep.subr.mxu1 %v73_v25  ;;  %v60_v39 = vld [vmem:[%s4016_s1 + $0xd0] sm:$0xff]  ;;  %v55_v40 = vld [vmem:[%s4016_s1 + $0xa8] sm:$0xff]  ;;  %v57_v41 = vld [vmem:[%s4016_s1 + $0xb8] sm:$0xff] }
   0xf   :  { %197 = vmatpush1.msra.mxu0 %v70_v26  ;;  %268 = vmatpush1.msra.mxu1 %v72_v27  ;;  %v54_v42 = vld [vmem:[%s4016_s1 + $0xa0] sm:$0xff]  ;;  %v56_v43 = vld [vmem:[%s4016_s1 + $0xb0] sm:$0xff]  ;;  %v51_v44 = vld [vmem:[%s4016_s1 + $0x88] sm:$0xff] }
  0x10   :  { %198 = vmatprep.subr.mxu0 %v67_v28  ;;  %269 = vmatprep.subr.mxu1 %v69_v29  ;;  %v53_v45 = vld [vmem:[%s4016_s1 + $0x98] sm:$0xff]  ;;  %v50_v46 = vld [vmem:[%s4016_s1 + $0x80] sm:$0xff]  ;;  %v52_v47 = vld [vmem:[%s4016_s1 + $0x90] sm:$0xff] }
  0x11   :  { %199 = vmatpush1.msra.mxu0 %v66_v30  ;;  %270 = vmatpush1.msra.mxu1 %v68_v31  ;;  %v47_v48 = vld [vmem:[%s4016_s1 + $0x68] sm:$0xff]  ;;  %v49_v49 = vld [vmem:[%s4016_s1 + $0x78] sm:$0xff]  ;;  %v46_v50 = vld [vmem:[%s4016_s1 + $0x60] sm:$0xff] }
  0x12   :  { %200 = vmatprep.subr.mxu0 %v63_v32  ;;  %271 = vmatprep.subr.mxu1 %v65_v33  ;;  %v48_v51 = vld [vmem:[%s4016_s1 + $0x70] sm:$0xff]  ;;  %v43_v52 = vld [vmem:[%s4016_s1 + $0x48] sm:$0xff]  ;;  %v45_v53 = vld [vmem:[%s4016_s1 + $0x58] sm:$0xff] }
  0x13   :  { %201 = vmatpush1.msra.mxu0 %v62_v34  ;;  %272 = vmatpush1.msra.mxu1 %v64_v35  ;;  %v42_v54 = vld [vmem:[%s4016_s1 + $0x40] sm:$0xff]  ;;  %v44_v55 = vld [vmem:[%s4016_s1 + $0x50] sm:$0xff]  ;;  %v39_v56 = vld [vmem:[%s4016_s1 + $0x28] sm:$0xff] }
  0x14   :  { %202 = vmatprep.subr.mxu0 %v59_v36  ;;  %273 = vmatprep.subr.mxu1 %v61_v37  ;;  %v41_v57 = vld [vmem:[%s4016_s1 + $0x38] sm:$0xff]  ;;  %v38_v58 = vld [vmem:[%s4016_s1 + $0x20] sm:$0xff]  ;;  %v40_v59 = vld [vmem:[%s4016_s1 + $0x30] sm:$0xff] }
  0x15   :  { %203 = vmatpush1.msra.mxu0 %v58_v38  ;;  %274 = vmatpush1.msra.mxu1 %v60_v39  ;;  %v35_v60 = vld [vmem:[%s4016_s1 + $0x8] sm:$0xff]  ;;  %v37_v61 = vld [vmem:[%s4016_s1 + $0x18] sm:$0xff]  ;;  %v34_v62 = vld [vmem:[%s4016_s1] sm:$0xff] }
  0x16   :  { %204 = vmatprep.subr.mxu0 %v55_v40  ;;  %275 = vmatprep.subr.mxu1 %v57_v41  ;;  %v36_v63 = vld [vmem:[%s4016_s1 + $0x10] sm:$0xff]  ;;  %v159_v0 = vld [vmem:[%s4016_s1 + $0x3e8] sm:$0xff]  ;;  %v161_v1 = vld [vmem:[%s4016_s1 + $0x3f8] sm:$0xff] }
  0x17   :  { %205 = vmatpush1.msra.mxu0 %v54_v42  ;;  %276 = vmatpush1.msra.mxu1 %v56_v43  ;;  %v158_v2 = vld [vmem:[%s4016_s1 + $0x3e0] sm:$0xff]  ;;  %v160_v3 = vld [vmem:[%s4016_s1 + $0x3f0] sm:$0xff]  ;;  %v155_v4 = vld [vmem:[%s4016_s1 + $0x3c8] sm:$0xff] }
  0x18   :  { %206 = vmatprep.subr.mxu0 %v51_v44  ;;  %277 = vmatprep.subr.mxu1 %v53_v45  ;;  %v157_v5 = vld [vmem:[%s4016_s1 + $0x3d8] sm:$0xff]  ;;  %v154_v6 = vld [vmem:[%s4016_s1 + $0x3c0] sm:$0xff]  ;;  %v156_v7 = vld [vmem:[%s4016_s1 + $0x3d0] sm:$0xff] }
  0x19   :  { %207 = vmatpush1.msra.mxu0 %v50_v46  ;;  %278 = vmatpush1.msra.mxu1 %v52_v47  ;;  %v151_v8 = vld [vmem:[%s4016_s1 + $0x3a8] sm:$0xff]  ;;  %v153_v9 = vld [vmem:[%s4016_s1 + $0x3b8] sm:$0xff]  ;;  %v150_v10 = vld [vmem:[%s4016_s1 + $0x3a0] sm:$0xff] }
  0x1a   :  { %208 = vmatprep.subr.mxu0 %v47_v48  ;;  %279 = vmatprep.subr.mxu1 %v49_v49  ;;  %v152_v11 = vld [vmem:[%s4016_s1 + $0x3b0] sm:$0xff]  ;;  %v147_v12 = vld [vmem:[%s4016_s1 + $0x388] sm:$0xff]  ;;  %v149_v13 = vld [vmem:[%s4016_s1 + $0x398] sm:$0xff] }
  0x1b   :  { %209 = vmatpush1.msra.mxu0 %v46_v50  ;;  %280 = vmatpush1.msra.mxu1 %v48_v51  ;;  %v146_v14 = vld [vmem:[%s4016_s1 + $0x380] sm:$0xff]  ;;  %v148_v15 = vld [vmem:[%s4016_s1 + $0x390] sm:$0xff]  ;;  %v143_v16 = vld [vmem:[%s4016_s1 + $0x368] sm:$0xff] }
  0x1c   :  { %210 = vmatprep.subr.mxu0 %v43_v52  ;;  %281 = vmatprep.subr.mxu1 %v45_v53  ;;  %v145_v17 = vld [vmem:[%s4016_s1 + $0x378] sm:$0xff]  ;;  %v142_v18 = vld [vmem:[%s4016_s1 + $0x360] sm:$0xff]  ;;  %v144_v19 = vld [vmem:[%s4016_s1 + $0x370] sm:$0xff] }
  0x1d   :  { %211 = vmatpush1.msra.mxu0 %v42_v54  ;;  %282 = vmatpush1.msra.mxu1 %v44_v55  ;;  %v139_v20 = vld [vmem:[%s4016_s1 + $0x348] sm:$0xff]  ;;  %v141_v21 = vld [vmem:[%s4016_s1 + $0x358] sm:$0xff]  ;;  %v138_v22 = vld [vmem:[%s4016_s1 + $0x340] sm:$0xff] }
  0x1e   :  { %212 = vmatprep.subr.mxu0 %v39_v56  ;;  %283 = vmatprep.subr.mxu1 %v41_v57  ;;  %v140_v23 = vld [vmem:[%s4016_s1 + $0x350] sm:$0xff]  ;;  %v135_v24 = vld [vmem:[%s4016_s1 + $0x328] sm:$0xff]  ;;  %v137_v25 = vld [vmem:[%s4016_s1 + $0x338] sm:$0xff] }
  0x1f   :  { %213 = vmatpush1.msra.mxu0 %v38_v58  ;;  %284 = vmatpush1.msra.mxu1 %v40_v59  ;;  %v134_v26 = vld [vmem:[%s4016_s1 + $0x320] sm:$0xff]  ;;  %v136_v27 = vld [vmem:[%s4016_s1 + $0x330] sm:$0xff]  ;;  %v131_v28 = vld [vmem:[%s4016_s1 + $0x308] sm:$0xff] }
  0x20   :  { %214 = vmatprep.subr.mxu0 %v35_v60  ;;  %285 = vmatprep.subr.mxu1 %v37_v61  ;;  %v133_v29 = vld [vmem:[%s4016_s1 + $0x318] sm:$0xff]  ;;  %v130_v30 = vld [vmem:[%s4016_s1 + $0x300] sm:$0xff]  ;;  %v132_v31 = vld [vmem:[%s4016_s1 + $0x310] sm:$0xff] }
  0x21   :  { %215 = vmatpush1.msra.mxu0 %v34_v62  ;;  %286 = vmatpush1.msra.mxu1 %v36_v63  ;;  %v127_v32 = vld [vmem:[%s4016_s1 + $0x2e8] sm:$0xff]  ;;  %v129_v33 = vld [vmem:[%s4016_s1 + $0x2f8] sm:$0xff]  ;;  %v126_v34 = vld [vmem:[%s4016_s1 + $0x2e0] sm:$0xff] }
  0x22   :  { %216 = vmatprep.subr.mxu0 %v159_v0  ;;  %287 = vmatprep.subr.mxu1 %v161_v1  ;;  %v128_v35 = vld [vmem:[%s4016_s1 + $0x2f0] sm:$0xff]  ;;  %v123_v36 = vld [vmem:[%s4016_s1 + $0x2c8] sm:$0xff]  ;;  %v125_v37 = vld [vmem:[%s4016_s1 + $0x2d8] sm:$0xff] }
  0x23   :  { %217 = vmatpush2.msra.mxu0 %v158_v2  ;;  %288 = vmatpush2.msra.mxu1 %v160_v3  ;;  %v122_v38 = vld [vmem:[%s4016_s1 + $0x2c0] sm:$0xff]  ;;  %v124_v39 = vld [vmem:[%s4016_s1 + $0x2d0] sm:$0xff]  ;;  %v119_v40 = vld [vmem:[%s4016_s1 + $0x2a8] sm:$0xff] }
  0x24   :  { %218 = vmatprep.subr.mxu0 %v155_v4  ;;  %289 = vmatprep.subr.mxu1 %v157_v5  ;;  %v121_v41 = vld [vmem:[%s4016_s1 + $0x2b8] sm:$0xff]  ;;  %v118_v42 = vld [vmem:[%s4016_s1 + $0x2a0] sm:$0xff]  ;;  %v120_v43 = vld [vmem:[%s4016_s1 + $0x2b0] sm:$0xff] }
  0x25   :  { %219 = vmatpush2.msra.mxu0 %v154_v6  ;;  %290 = vmatpush2.msra.mxu1 %v156_v7  ;;  %v115_v44 = vld [vmem:[%s4016_s1 + $0x288] sm:$0xff]  ;;  %v117_v45 = vld [vmem:[%s4016_s1 + $0x298] sm:$0xff]  ;;  %v114_v46 = vld [vmem:[%s4016_s1 + $0x280] sm:$0xff] }
  0x26   :  { %220 = vmatprep.subr.mxu0 %v151_v8  ;;  %291 = vmatprep.subr.mxu1 %v153_v9  ;;  %v116_v47 = vld [vmem:[%s4016_s1 + $0x290] sm:$0xff]  ;;  %v111_v48 = vld [vmem:[%s4016_s1 + $0x268] sm:$0xff]  ;;  %v113_v49 = vld [vmem:[%s4016_s1 + $0x278] sm:$0xff] }
  0x27   :  { %221 = vmatpush2.msra.mxu0 %v150_v10  ;;  %292 = vmatpush2.msra.mxu1 %v152_v11  ;;  %v110_v50 = vld [vmem:[%s4016_s1 + $0x260] sm:$0xff]  ;;  %v112_v51 = vld [vmem:[%s4016_s1 + $0x270] sm:$0xff]  ;;  %v107_v52 = vld [vmem:[%s4016_s1 + $0x248] sm:$0xff] }
  0x28   :  { %222 = vmatprep.subr.mxu0 %v147_v12  ;;  %293 = vmatprep.subr.mxu1 %v149_v13  ;;  %v109_v53 = vld [vmem:[%s4016_s1 + $0x258] sm:$0xff]  ;;  %v106_v54 = vld [vmem:[%s4016_s1 + $0x240] sm:$0xff]  ;;  %v108_v55 = vld [vmem:[%s4016_s1 + $0x250] sm:$0xff] }
  0x29   :  { %223 = vmatpush2.msra.mxu0 %v146_v14  ;;  %294 = vmatpush2.msra.mxu1 %v148_v15  ;;  %v103_v56 = vld [vmem:[%s4016_s1 + $0x228] sm:$0xff]  ;;  %v105_v57 = vld [vmem:[%s4016_s1 + $0x238] sm:$0xff]  ;;  %v102_v58 = vld [vmem:[%s4016_s1 + $0x220] sm:$0xff] }
  0x2a   :  { %224 = vmatprep.subr.mxu0 %v143_v16  ;;  %295 = vmatprep.subr.mxu1 %v145_v17  ;;  %v104_v59 = vld [vmem:[%s4016_s1 + $0x230] sm:$0xff]  ;;  %v99_v60 = vld [vmem:[%s4016_s1 + $0x208] sm:$0xff]  ;;  %v101_v61 = vld [vmem:[%s4016_s1 + $0x218] sm:$0xff] }
  0x2b   :  { %225 = vmatpush2.msra.mxu0 %v142_v18  ;;  %296 = vmatpush2.msra.mxu1 %v144_v19  ;;  %v98_v62 = vld [vmem:[%s4016_s1 + $0x200] sm:$0xff]  ;;  %v33_v63 = vld [vmem:[%s4017_s0 + $0x8] sm:$0xff]  ;;  %v100_v0 = vld [vmem:[%s4016_s1 + $0x210] sm:$0xff] }
  0x2c   :  { %226 = vmatprep.subr.mxu0 %v139_v20  ;;  %297 = vmatprep.subr.mxu1 %v141_v21  ;;  %v32_v1 = vld [vmem:[%s4017_s0] sm:$0xff]  ;;  %v391_v2 = vld [vmem:[%s4018_s3 + $0x1e8] sm:$0xff] }
  0x2d   :  { %227 = vmatpush2.msra.mxu0 %v138_v22  ;;  %298 = vmatpush2.msra.mxu1 %v140_v23  ;;  %v519_v3 = vld [vmem:[%s4018_s3 + $0x5e8] sm:$0xff]  ;;  %v390_v4 = vld [vmem:[%s4018_s3 + $0x1e0] sm:$0xff] }
  0x2e   :  { %228 = vmatprep.subr.mxu0 %v135_v24  ;;  %299 = vmatprep.subr.mxu1 %v137_v25  ;;  %v518_v5 = vld [vmem:[%s4018_s3 + $0x5e0] sm:$0xff]  ;;  %v387_v6 = vld [vmem:[%s4018_s3 + $0x1c8] sm:$0xff] }
  0x2f   :  { %229 = vmatpush2.msra.mxu0 %v134_v26  ;;  %300 = vmatpush2.msra.mxu1 %v136_v27  ;;  %v515_v7 = vld [vmem:[%s4018_s3 + $0x5c8] sm:$0xff]  ;;  %v386_v8 = vld [vmem:[%s4018_s3 + $0x1c0] sm:$0xff] }
  0x30   :  { %230 = vmatprep.subr.mxu0 %v131_v28  ;;  %301 = vmatprep.subr.mxu1 %v133_v29  ;;  %v514_v9 = vld [vmem:[%s4018_s3 + $0x5c0] sm:$0xff]  ;;  %v383_v10 = vld [vmem:[%s4018_s3 + $0x1a8] sm:$0xff] }
  0x31   :  { %231 = vmatpush2.msra.mxu0 %v130_v30  ;;  %302 = vmatpush2.msra.mxu1 %v132_v31  ;;  %v511_v11 = vld [vmem:[%s4018_s3 + $0x5a8] sm:$0xff]  ;;  %v382_v12 = vld [vmem:[%s4018_s3 + $0x1a0] sm:$0xff] }
  0x32   :  { %232 = vmatprep.subr.mxu0 %v127_v32  ;;  %303 = vmatprep.subr.mxu1 %v129_v33  ;;  %v510_v13 = vld [vmem:[%s4018_s3 + $0x5a0] sm:$0xff]  ;;  %v379_v14 = vld [vmem:[%s4018_s3 + $0x188] sm:$0xff] }
  0x33   :  { %233 = vmatpush2.msra.mxu0 %v126_v34  ;;  %304 = vmatpush2.msra.mxu1 %v128_v35  ;;  %v507_v15 = vld [vmem:[%s4018_s3 + $0x588] sm:$0xff]  ;;  %v378_v16 = vld [vmem:[%s4018_s3 + $0x180] sm:$0xff] }
  0x34   :  { %234 = vmatprep.subr.mxu0 %v123_v36  ;;  %305 = vmatprep.subr.mxu1 %v125_v37  ;;  %v506_v17 = vld [vmem:[%s4018_s3 + $0x580] sm:$0xff]  ;;  %v375_v18 = vld [vmem:[%s4018_s3 + $0x168] sm:$0xff] }
  0x35   :  { %235 = vmatpush2.msra.mxu0 %v122_v38  ;;  %306 = vmatpush2.msra.mxu1 %v124_v39  ;;  %v503_v19 = vld [vmem:[%s4018_s3 + $0x568] sm:$0xff]  ;;  %v374_v20 = vld [vmem:[%s4018_s3 + $0x160] sm:$0xff] }
  0x36   :  { %236 = vmatprep.subr.mxu0 %v119_v40  ;;  %307 = vmatprep.subr.mxu1 %v121_v41  ;;  %v502_v21 = vld [vmem:[%s4018_s3 + $0x560] sm:$0xff]  ;;  %v371_v22 = vld [vmem:[%s4018_s3 + $0x148] sm:$0xff] }
  0x37   :  { %237 = vmatpush2.msra.mxu0 %v118_v42  ;;  %308 = vmatpush2.msra.mxu1 %v120_v43  ;;  %v499_v23 = vld [vmem:[%s4018_s3 + $0x548] sm:$0xff]  ;;  %v370_v24 = vld [vmem:[%s4018_s3 + $0x140] sm:$0xff] }
  0x38   :  { %238 = vmatprep.subr.mxu0 %v115_v44  ;;  %309 = vmatprep.subr.mxu1 %v117_v45  ;;  %v498_v25 = vld [vmem:[%s4018_s3 + $0x540] sm:$0xff]  ;;  %v367_v26 = vld [vmem:[%s4018_s3 + $0x128] sm:$0xff] }
  0x39   :  { %239 = vmatpush2.msra.mxu0 %v114_v46  ;;  %310 = vmatpush2.msra.mxu1 %v116_v47  ;;  %v495_v27 = vld [vmem:[%s4018_s3 + $0x528] sm:$0xff]  ;;  %v366_v28 = vld [vmem:[%s4018_s3 + $0x120] sm:$0xff] }
  0x3a   :  { %240 = vmatprep.subr.mxu0 %v111_v48  ;;  %311 = vmatprep.subr.mxu1 %v113_v49  ;;  %v494_v29 = vld [vmem:[%s4018_s3 + $0x520] sm:$0xff]  ;;  %v363_v30 = vld [vmem:[%s4018_s3 + $0x108] sm:$0xff] }
  0x3b   :  { %241 = vmatpush2.msra.mxu0 %v110_v50  ;;  %312 = vmatpush2.msra.mxu1 %v112_v51  ;;  %v491_v31 = vld [vmem:[%s4018_s3 + $0x508] sm:$0xff]  ;;  %v362_v32 = vld [vmem:[%s4018_s3 + $0x100] sm:$0xff] }
  0x3c   :  { %242 = vmatprep.subr.mxu0 %v107_v52  ;;  %313 = vmatprep.subr.mxu1 %v109_v53  ;;  %v490_v33 = vld [vmem:[%s4018_s3 + $0x500] sm:$0xff]  ;;  %v359_v34 = vld [vmem:[%s4018_s3 + $0xe8] sm:$0xff] }
  0x3d   :  { %243 = vmatpush2.msra.mxu0 %v106_v54  ;;  %314 = vmatpush2.msra.mxu1 %v108_v55  ;;  %v487_v35 = vld [vmem:[%s4018_s3 + $0x4e8] sm:$0xff]  ;;  %v358_v36 = vld [vmem:[%s4018_s3 + $0xe0] sm:$0xff] }
  0x3e   :  { %244 = vmatprep.subr.mxu0 %v103_v56  ;;  %315 = vmatprep.subr.mxu1 %v105_v57  ;;  %v486_v37 = vld [vmem:[%s4018_s3 + $0x4e0] sm:$0xff]  ;;  %v355_v38 = vld [vmem:[%s4018_s3 + $0xc8] sm:$0xff] }
  0x3f   :  { %245 = vmatpush2.msra.mxu0 %v102_v58  ;;  %316 = vmatpush2.msra.mxu1 %v104_v59  ;;  %v483_v39 = vld [vmem:[%s4018_s3 + $0x4c8] sm:$0xff]  ;;  %v354_v40 = vld [vmem:[%s4018_s3 + $0xc0] sm:$0xff] }
  0x40   :  { %246 = vmatprep.subr.mxu0 %v99_v60  ;;  %317 = vmatprep.subr.mxu1 %v101_v61  ;;  %v482_v41 = vld [vmem:[%s4018_s3 + $0x4c0] sm:$0xff]  ;;  %v351_v42 = vld [vmem:[%s4018_s3 + $0xa8] sm:$0xff] }
  0x41   :  { %247 = vmatpush2.msra.mxu0 %v98_v62  ;;  %248 = vmatprep.mubr.f32.mxu0 %v33_v63  ;;  %v479_v43 = vld [vmem:[%s4018_s3 + $0x4a8] sm:$0xff]  ;;  %v350_v44 = vld [vmem:[%s4018_s3 + $0xa0] sm:$0xff] }
  0x42   :  { %318 = vmatpush2.msra.mxu1 %v100_v0  ;;  %319 = vmatprep.mubr.f32.mxu1 %v33_v63  ;;  %v478_v45 = vld [vmem:[%s4018_s3 + $0x4a0] sm:$0xff]  ;;  %v347_v46 = vld [vmem:[%s4018_s3 + $0x88] sm:$0xff] }
  0x43   :  { %249 = vmatmul.mubr.f32.vlgmr.msra.gmra.mxu0 %v32_v1  ;;  %320 = vmatmul.mubr.f32.vlgmr.msra.gmra.mxu1 %v32_v1  ;;  %v475_v47 = vld [vmem:[%s4018_s3 + $0x488] sm:$0xff]  ;;  %v346_v48 = vld [vmem:[%s4018_s3 + $0x80] sm:$0xff] }
  0x44   :  { %608 = vmatprep.subr.mxu0 %v391_v2  ;;  %679 = vmatprep.subr.mxu1 %v519_v3  ;;  %v474_v49 = vld [vmem:[%s4018_s3 + $0x480] sm:$0xff]  ;;  %v343_v50 = vld [vmem:[%s4018_s3 + $0x68] sm:$0xff] }
  0x45   :  { %609 = vmatpush1.msra.mxu0 %v390_v4  ;;  %680 = vmatpush1.msra.mxu1 %v518_v5  ;;  %v471_v51 = vld [vmem:[%s4018_s3 + $0x468] sm:$0xff]  ;;  %v342_v52 = vld [vmem:[%s4018_s3 + $0x60] sm:$0xff] }
  0x46   :  { %610 = vmatprep.subr.mxu0 %v387_v6  ;;  %681 = vmatprep.subr.mxu1 %v515_v7  ;;  %v470_v53 = vld [vmem:[%s4018_s3 + $0x460] sm:$0xff]  ;;  %v339_v54 = vld [vmem:[%s4018_s3 + $0x48] sm:$0xff] }
  0x47   :  { %611 = vmatpush1.msra.mxu0 %v386_v8  ;;  %682 = vmatpush1.msra.mxu1 %v514_v9  ;;  %v467_v55 = vld [vmem:[%s4018_s3 + $0x448] sm:$0xff]  ;;  %v338_v56 = vld [vmem:[%s4018_s3 + $0x40] sm:$0xff] }
  0x48   :  { %612 = vmatprep.subr.mxu0 %v383_v10  ;;  %683 = vmatprep.subr.mxu1 %v511_v11  ;;  %v466_v57 = vld [vmem:[%s4018_s3 + $0x440] sm:$0xff]  ;;  %v335_v58 = vld [vmem:[%s4018_s3 + $0x28] sm:$0xff] }
  0x49   :  { %613 = vmatpush1.msra.mxu0 %v382_v12  ;;  %684 = vmatpush1.msra.mxu1 %v510_v13  ;;  %v463_v59 = vld [vmem:[%s4018_s3 + $0x428] sm:$0xff]  ;;  %v334_v60 = vld [vmem:[%s4018_s3 + $0x20] sm:$0xff] }
  0x4a   :  { %614 = vmatprep.subr.mxu0 %v379_v14  ;;  %685 = vmatprep.subr.mxu1 %v507_v15  ;;  %v462_v61 = vld [vmem:[%s4018_s3 + $0x420] sm:$0xff]  ;;  %v331_v62 = vld [vmem:[%s4018_s3 + $0x8] sm:$0xff] }
  0x4b   :  { %615 = vmatpush1.msra.mxu0 %v378_v16  ;;  %686 = vmatpush1.msra.mxu1 %v506_v17  ;;  %v459_v63 = vld [vmem:[%s4018_s3 + $0x408] sm:$0xff]  ;;  %v330_v0 = vld [vmem:[%s4018_s3] sm:$0xff] }
  0x4c   :  { %616 = vmatprep.subr.mxu0 %v375_v18  ;;  %687 = vmatprep.subr.mxu1 %v503_v19  ;;  %v458_v1 = vld [vmem:[%s4018_s3 + $0x400] sm:$0xff]  ;;  %v455_v2 = vld [vmem:[%s4018_s3 + $0x3e8] sm:$0xff] }
  0x4d   :  { %617 = vmatpush1.msra.mxu0 %v374_v20  ;;  %688 = vmatpush1.msra.mxu1 %v502_v21  ;;  %v583_v3 = vld [vmem:[%s4018_s3 + $0x7e8] sm:$0xff]  ;;  %v454_v4 = vld [vmem:[%s4018_s3 + $0x3e0] sm:$0xff] }
  0x4e   :  { %618 = vmatprep.subr.mxu0 %v371_v22  ;;  %689 = vmatprep.subr.mxu1 %v499_v23  ;;  %v582_v5 = vld [vmem:[%s4018_s3 + $0x7e0] sm:$0xff]  ;;  %v451_v6 = vld [vmem:[%s4018_s3 + $0x3c8] sm:$0xff] }
  0x4f   :  { %619 = vmatpush1.msra.mxu0 %v370_v24  ;;  %690 = vmatpush1.msra.mxu1 %v498_v25  ;;  %v579_v7 = vld [vmem:[%s4018_s3 + $0x7c8] sm:$0xff]  ;;  %v450_v8 = vld [vmem:[%s4018_s3 + $0x3c0] sm:$0xff] }
  0x50   :  { %620 = vmatprep.subr.mxu0 %v367_v26  ;;  %691 = vmatprep.subr.mxu1 %v495_v27  ;;  %v578_v9 = vld [vmem:[%s4018_s3 + $0x7c0] sm:$0xff]  ;;  %v447_v10 = vld [vmem:[%s4018_s3 + $0x3a8] sm:$0xff] }
  0x51   :  { %621 = vmatpush1.msra.mxu0 %v366_v28  ;;  %692 = vmatpush1.msra.mxu1 %v494_v29  ;;  %v575_v11 = vld [vmem:[%s4018_s3 + $0x7a8] sm:$0xff]  ;;  %v446_v12 = vld [vmem:[%s4018_s3 + $0x3a0] sm:$0xff] }
  0x52   :  { %622 = vmatprep.subr.mxu0 %v363_v30  ;;  %693 = vmatprep.subr.mxu1 %v491_v31  ;;  %v574_v13 = vld [vmem:[%s4018_s3 + $0x7a0] sm:$0xff]  ;;  %v443_v14 = vld [vmem:[%s4018_s3 + $0x388] sm:$0xff] }
  0x53   :  { %623 = vmatpush1.msra.mxu0 %v362_v32  ;;  %694 = vmatpush1.msra.mxu1 %v490_v33  ;;  %v571_v15 = vld [vmem:[%s4018_s3 + $0x788] sm:$0xff]  ;;  %v442_v16 = vld [vmem:[%s4018_s3 + $0x380] sm:$0xff] }
  0x54   :  { %624 = vmatprep.subr.mxu0 %v359_v34  ;;  %695 = vmatprep.subr.mxu1 %v487_v35  ;;  %v570_v17 = vld [vmem:[%s4018_s3 + $0x780] sm:$0xff]  ;;  %v439_v18 = vld [vmem:[%s4018_s3 + $0x368] sm:$0xff] }
  0x55   :  { %625 = vmatpush1.msra.mxu0 %v358_v36  ;;  %696 = vmatpush1.msra.mxu1 %v486_v37  ;;  %v567_v19 = vld [vmem:[%s4018_s3 + $0x768] sm:$0xff]  ;;  %v438_v20 = vld [vmem:[%s4018_s3 + $0x360] sm:$0xff] }
  0x56   :  { %626 = vmatprep.subr.mxu0 %v355_v38  ;;  %697 = vmatprep.subr.mxu1 %v483_v39  ;;  %v566_v21 = vld [vmem:[%s4018_s3 + $0x760] sm:$0xff]  ;;  %v435_v22 = vld [vmem:[%s4018_s3 + $0x348] sm:$0xff] }
  0x57   :  { %627 = vmatpush1.msra.mxu0 %v354_v40  ;;  %698 = vmatpush1.msra.mxu1 %v482_v41  ;;  %v563_v23 = vld [vmem:[%s4018_s3 + $0x748] sm:$0xff]  ;;  %v434_v24 = vld [vmem:[%s4018_s3 + $0x340] sm:$0xff] }
  0x58   :  { %628 = vmatprep.subr.mxu0 %v351_v42  ;;  %699 = vmatprep.subr.mxu1 %v479_v43  ;;  %v562_v25 = vld [vmem:[%s4018_s3 + $0x740] sm:$0xff]  ;;  %v431_v26 = vld [vmem:[%s4018_s3 + $0x328] sm:$0xff] }
  0x59   :  { %629 = vmatpush1.msra.mxu0 %v350_v44  ;;  %700 = vmatpush1.msra.mxu1 %v478_v45  ;;  %v559_v27 = vld [vmem:[%s4018_s3 + $0x728] sm:$0xff]  ;;  %v430_v28 = vld [vmem:[%s4018_s3 + $0x320] sm:$0xff] }
  0x5a   :  { %630 = vmatprep.subr.mxu0 %v347_v46  ;;  %701 = vmatprep.subr.mxu1 %v475_v47  ;;  %v558_v29 = vld [vmem:[%s4018_s3 + $0x720] sm:$0xff]  ;;  %v427_v30 = vld [vmem:[%s4018_s3 + $0x308] sm:$0xff] }
  0x5b   :  { %631 = vmatpush1.msra.mxu0 %v346_v48  ;;  %702 = vmatpush1.msra.mxu1 %v474_v49  ;;  %v555_v31 = vld [vmem:[%s4018_s3 + $0x708] sm:$0xff]  ;;  %v426_v32 = vld [vmem:[%s4018_s3 + $0x300] sm:$0xff] }
  0x5c   :  { %632 = vmatprep.subr.mxu0 %v343_v50  ;;  %703 = vmatprep.subr.mxu1 %v471_v51  ;;  %v554_v33 = vld [vmem:[%s4018_s3 + $0x700] sm:$0xff]  ;;  %v423_v34 = vld [vmem:[%s4018_s3 + $0x2e8] sm:$0xff] }
  0x5d   :  { %633 = vmatpush1.msra.mxu0 %v342_v52  ;;  %704 = vmatpush1.msra.mxu1 %v470_v53  ;;  %v551_v35 = vld [vmem:[%s4018_s3 + $0x6e8] sm:$0xff]  ;;  %v422_v36 = vld [vmem:[%s4018_s3 + $0x2e0] sm:$0xff] }
  0x5e   :  { %634 = vmatprep.subr.mxu0 %v339_v54  ;;  %705 = vmatprep.subr.mxu1 %v467_v55  ;;  %v550_v37 = vld [vmem:[%s4018_s3 + $0x6e0] sm:$0xff]  ;;  %v419_v38 = vld [vmem:[%s4018_s3 + $0x2c8] sm:$0xff] }
  0x5f   :  { %635 = vmatpush1.msra.mxu0 %v338_v56  ;;  %706 = vmatpush1.msra.mxu1 %v466_v57  ;;  %v547_v39 = vld [vmem:[%s4018_s3 + $0x6c8] sm:$0xff]  ;;  %v418_v40 = vld [vmem:[%s4018_s3 + $0x2c0] sm:$0xff] }
  0x60   :  { %636 = vmatprep.subr.mxu0 %v335_v58  ;;  %707 = vmatprep.subr.mxu1 %v463_v59  ;;  %v546_v41 = vld [vmem:[%s4018_s3 + $0x6c0] sm:$0xff]  ;;  %v415_v42 = vld [vmem:[%s4018_s3 + $0x2a8] sm:$0xff] }
  0x61   :  { %637 = vmatpush1.msra.mxu0 %v334_v60  ;;  %708 = vmatpush1.msra.mxu1 %v462_v61  ;;  %v543_v43 = vld [vmem:[%s4018_s3 + $0x6a8] sm:$0xff]  ;;  %v414_v44 = vld [vmem:[%s4018_s3 + $0x2a0] sm:$0xff] }
  0x62   :  { %638 = vmatprep.subr.mxu0 %v331_v62  ;;  %709 = vmatprep.subr.mxu1 %v459_v63  ;;  %v542_v45 = vld [vmem:[%s4018_s3 + $0x6a0] sm:$0xff]  ;;  %v411_v46 = vld [vmem:[%s4018_s3 + $0x288] sm:$0xff] }
  0x63   :  { %639 = vmatpush1.msra.mxu0 %v330_v0  ;;  %710 = vmatpush1.msra.mxu1 %v458_v1  ;;  %v539_v47 = vld [vmem:[%s4018_s3 + $0x688] sm:$0xff]  ;;  %v410_v48 = vld [vmem:[%s4018_s3 + $0x280] sm:$0xff] }
  0x64   :  { %640 = vmatprep.subr.mxu0 %v455_v2  ;;  %711 = vmatprep.subr.mxu1 %v583_v3  ;;  %v538_v49 = vld [vmem:[%s4018_s3 + $0x680] sm:$0xff]  ;;  %v407_v50 = vld [vmem:[%s4018_s3 + $0x268] sm:$0xff]  ;;  %v393_v2 = vld [vmem:[%s4018_s3 + $0x1f8] sm:$0xff] }
  0x65   :  { %641 = vmatpush2.msra.mxu0 %v454_v4  ;;  %712 = vmatpush2.msra.mxu1 %v582_v5  ;;  %v535_v51 = vld [vmem:[%s4018_s3 + $0x668] sm:$0xff]  ;;  %v406_v52 = vld [vmem:[%s4018_s3 + $0x260] sm:$0xff]  ;;  %v521_v3 = vld [vmem:[%s4018_s3 + $0x5f8] sm:$0xff]  ;;  %v164_v4 = vlaneseq }
  0x66   :  { %642 = vmatprep.subr.mxu0 %v451_v6  ;;  %713 = vmatprep.subr.mxu1 %v579_v7  ;;  %v534_v53 = vld [vmem:[%s4018_s3 + $0x660] sm:$0xff]  ;;  %v403_v54 = vld [vmem:[%s4018_s3 + $0x248] sm:$0xff] }
  0x67   :  { %643 = vmatpush2.msra.mxu0 %v450_v8  ;;  %714 = vmatpush2.msra.mxu1 %v578_v9  ;;  %v531_v55 = vld [vmem:[%s4018_s3 + $0x648] sm:$0xff]  ;;  %v402_v56 = vld [vmem:[%s4018_s3 + $0x240] sm:$0xff]  ;;  %v165_v5 = vshrl.u32 %v164_v4, 7  ;;  %v480_v4 = vld [vmem:[%s4018_s3 + $0x4b0] sm:$0xff] }
  0x68   :  { %644 = vmatprep.subr.mxu0 %v447_v10  ;;  %715 = vmatprep.subr.mxu1 %v575_v11  ;;  %v530_v57 = vld [vmem:[%s4018_s3 + $0x640] sm:$0xff]  ;;  %v399_v58 = vld [vmem:[%s4018_s3 + $0x228] sm:$0xff] }
  0x69   :  { %645 = vmatpush2.msra.mxu0 %v446_v12  ;;  %716 = vmatpush2.msra.mxu1 %v574_v13  ;;  %v527_v59 = vld [vmem:[%s4018_s3 + $0x628] sm:$0xff]  ;;  %v398_v60 = vld [vmem:[%s4018_s3 + $0x220] sm:$0xff]  ;;  %v2615_v6 = vsub.s32 2, %v165_v5  ;;  %v2617_v7 = vsub.s32 0, %v165_v5  ;;  %v2622_v9 = vsub.s32 1, %v165_v5  ;;  %v2624_v10 = vsub.s32 3, %v165_v5 }
  0x6a   :  { %646 = vmatprep.subr.mxu0 %v443_v14  ;;  %717 = vmatprep.subr.mxu1 %v571_v15  ;;  %v526_v61 = vld [vmem:[%s4018_s3 + $0x620] sm:$0xff]  ;;  %v395_v62 = vld [vmem:[%s4018_s3 + $0x208] sm:$0xff]  ;;  %v349_v5 = vld [vmem:[%s4018_s3 + $0x98] sm:$0xff] }
  0x6b   :  { %647 = vmatpush2.msra.mxu0 %v442_v16  ;;  %718 = vmatpush2.msra.mxu1 %v570_v17  ;;  %v523_v63 = vld [vmem:[%s4018_s3 + $0x608] sm:$0xff]  ;;  %v394_v0 = vld [vmem:[%s4018_s3 + $0x200] sm:$0xff] }
  0x6c   :  { %648 = vmatprep.subr.mxu0 %v439_v18  ;;  %719 = vmatprep.subr.mxu1 %v567_v19  ;;  %v522_v1 = vld [vmem:[%s4018_s3 + $0x600] sm:$0xff] }
  0x6d   :  { %649 = vmatpush2.msra.mxu0 %v438_v20  ;;  %720 = vmatpush2.msra.mxu1 %v566_v21  ;;  %v162_v8 = vld [vmem:[%s4019_s2] sm:$0xf] }
  0x6e   :  { %650 = vmatprep.subr.mxu0 %v435_v22  ;;  %721 = vmatprep.subr.mxu1 %v563_v23  ;;  %v175_v11 = vrot.slane %v162_v8, %v2615_v6  ;;  %v167_v12 = vrot.slane %v162_v8, %v2617_v7  ;;  %v171_v13 = vrot.slane %v162_v8, %v2622_v9 }
  0x6f   :  { %651 = vmatpush2.msra.mxu0 %v434_v24  ;;  %722 = vmatpush2.msra.mxu1 %v562_v25  ;;  %v179_v14 = vrot.slane %v162_v8, %v2624_v10  ;;  %v477_v8 = vld [vmem:[%s4018_s3 + $0x498] sm:$0xff] }
  0x70   :  { %652 = vmatprep.subr.mxu0 %v431_v26  ;;  %723 = vmatprep.subr.mxu1 %v559_v27  ;;  %v392_v27 = vld [vmem:[%s4018_s3 + $0x1f0] sm:$0xff] }
  0x71   :  { %653 = vmatpush2.msra.mxu0 %v430_v28  ;;  %724 = vmatpush2.msra.mxu1 %v558_v29  ;;  %v520_v28 = vld [vmem:[%s4018_s3 + $0x5f0] sm:$0xff]  ;;  %v389_v29 = vld [vmem:[%s4018_s3 + $0x1d8] sm:$0xff] }
  0x72   :  { %654 = vmatprep.subr.mxu0 %v427_v30  ;;  %725 = vmatprep.subr.mxu1 %v555_v31  ;;  %v517_v30 = vld [vmem:[%s4018_s3 + $0x5d8] sm:$0xff]  ;;  %v388_v31 = vld [vmem:[%s4018_s3 + $0x1d0] sm:$0xff] }
  0x73   :  { %655 = vmatpush2.msra.mxu0 %v426_v32  ;;  %726 = vmatpush2.msra.mxu1 %v554_v33  ;;  %v516_v32 = vld [vmem:[%s4018_s3 + $0x5d0] sm:$0xff]  ;;  %v385_v33 = vld [vmem:[%s4018_s3 + $0x1b8] sm:$0xff] }
  0x74   :  { %656 = vmatprep.subr.mxu0 %v423_v34  ;;  %727 = vmatprep.subr.mxu1 %v551_v35  ;;  %v513_v34 = vld [vmem:[%s4018_s3 + $0x5b8] sm:$0xff]  ;;  %v384_v35 = vld [vmem:[%s4018_s3 + $0x1b0] sm:$0xff] }
  0x75   :  { %657 = vmatpush2.msra.mxu0 %v422_v36  ;;  %728 = vmatpush2.msra.mxu1 %v550_v37  ;;  %v512_v36 = vld [vmem:[%s4018_s3 + $0x5b0] sm:$0xff]  ;;  %v381_v37 = vld [vmem:[%s4018_s3 + $0x198] sm:$0xff] }
  0x76   :  { %658 = vmatprep.subr.mxu0 %v419_v38  ;;  %729 = vmatprep.subr.mxu1 %v547_v39  ;;  %v509_v38 = vld [vmem:[%s4018_s3 + $0x598] sm:$0xff]  ;;  %v380_v39 = vld [vmem:[%s4018_s3 + $0x190] sm:$0xff] }
  0x77   :  { %659 = vmatpush2.msra.mxu0 %v418_v40  ;;  %730 = vmatpush2.msra.mxu1 %v546_v41  ;;  %v508_v40 = vld [vmem:[%s4018_s3 + $0x590] sm:$0xff]  ;;  %v377_v41 = vld [vmem:[%s4018_s3 + $0x178] sm:$0xff] }
  0x78   :  { %660 = vmatprep.subr.mxu0 %v415_v42  ;;  %731 = vmatprep.subr.mxu1 %v543_v43  ;;  %v505_v42 = vld [vmem:[%s4018_s3 + $0x578] sm:$0xff]  ;;  %v376_v43 = vld [vmem:[%s4018_s3 + $0x170] sm:$0xff] }
  0x79   :  { %661 = vmatpush2.msra.mxu0 %v414_v44  ;;  %732 = vmatpush2.msra.mxu1 %v542_v45  ;;  %v504_v44 = vld [vmem:[%s4018_s3 + $0x570] sm:$0xff]  ;;  %v373_v45 = vld [vmem:[%s4018_s3 + $0x158] sm:$0xff] }
  0x7a   :  { %662 = vmatprep.subr.mxu0 %v411_v46  ;;  %733 = vmatprep.subr.mxu1 %v539_v47  ;;  %v501_v46 = vld [vmem:[%s4018_s3 + $0x558] sm:$0xff]  ;;  %v372_v47 = vld [vmem:[%s4018_s3 + $0x150] sm:$0xff] }
  0x7b   :  { %663 = vmatpush2.msra.mxu0 %v410_v48  ;;  %734 = vmatpush2.msra.mxu1 %v538_v49  ;;  %v500_v48 = vld [vmem:[%s4018_s3 + $0x550] sm:$0xff]  ;;  %v369_v49 = vld [vmem:[%s4018_s3 + $0x138] sm:$0xff] }
  0x7c   :  { %664 = vmatprep.subr.mxu0 %v407_v50  ;;  %735 = vmatprep.subr.mxu1 %v535_v51  ;;  %v497_v50 = vld [vmem:[%s4018_s3 + $0x538] sm:$0xff]  ;;  %v368_v51 = vld [vmem:[%s4018_s3 + $0x130] sm:$0xff] }
  0x7d   :  { %665 = vmatpush2.msra.mxu0 %v406_v52  ;;  %736 = vmatpush2.msra.mxu1 %v534_v53  ;;  %v496_v52 = vld [vmem:[%s4018_s3 + $0x530] sm:$0xff]  ;;  %v365_v53 = vld [vmem:[%s4018_s3 + $0x118] sm:$0xff] }
  0x7e   :  { %666 = vmatprep.subr.mxu0 %v403_v54  ;;  %737 = vmatprep.subr.mxu1 %v531_v55  ;;  %v493_v54 = vld [vmem:[%s4018_s3 + $0x518] sm:$0xff]  ;;  %v364_v55 = vld [vmem:[%s4018_s3 + $0x110] sm:$0xff] }
  0x7f   :  { %667 = vmatpush2.msra.mxu0 %v402_v56  ;;  %738 = vmatpush2.msra.mxu1 %v530_v57  ;;  %v492_v56 = vld [vmem:[%s4018_s3 + $0x510] sm:$0xff]  ;;  %v361_v57 = vld [vmem:[%s4018_s3 + $0xf8] sm:$0xff] }
  0x80   :  { %668 = vmatprep.subr.mxu0 %v399_v58  ;;  %739 = vmatprep.subr.mxu1 %v527_v59  ;;  %v489_v58 = vld [vmem:[%s4018_s3 + $0x4f8] sm:$0xff]  ;;  %v360_v59 = vld [vmem:[%s4018_s3 + $0xf0] sm:$0xff] }
  0x81   :  { %669 = vmatpush2.msra.mxu0 %v398_v60  ;;  %740 = vmatpush2.msra.mxu1 %v526_v61  ;;  %v488_v60 = vld [vmem:[%s4018_s3 + $0x4f0] sm:$0xff]  ;;  %v357_v61 = vld [vmem:[%s4018_s3 + $0xd8] sm:$0xff] }
  0x82   :  { %670 = vmatprep.subr.mxu0 %v395_v62  ;;  %741 = vmatprep.subr.mxu1 %v523_v63  ;;  %v485_v62 = vld [vmem:[%s4018_s3 + $0x4d8] sm:$0xff]  ;;  %v356_v63 = vld [vmem:[%s4018_s3 + $0xd0] sm:$0xff] }
  0x83   :  { %671 = vmatpush2.msra.mxu0 %v394_v0  ;;  %742 = vmatpush2.msra.mxu1 %v522_v1  ;;  %v484_v0 = vld [vmem:[%s4018_s3 + $0x4d0] sm:$0xff]  ;;  %v353_v1 = vld [vmem:[%s4018_s3 + $0xb8] sm:$0xff] }
  0x84   :  { %750 = vmatprep.subr.mxu0 %v393_v2  ;;  %821 = vmatprep.subr.mxu1 %v521_v3  ;;  %v481_v2 = vld [vmem:[%s4018_s3 + $0x4b8] sm:$0xff]  ;;  %v352_v3 = vld [vmem:[%s4018_s3 + $0xb0] sm:$0xff] }
 0x103   :  { %v250_v15 = vpop.f32.mrf.mxu0  ;;  %v321_v16 = vpop.f32.mrf.mxu1 }
 0x104   :  { %v2630_v17 = vadd.f32 %v321_v16, %v175_v11  ;;  %v2632_v18 = vadd.f32 %v250_v15, %v167_v12  ;;  %v348_v11 = vld [vmem:[%s4018_s3 + $0x90] sm:$0xff] }
 0x105   :  { %v252_v19 = vpop.f32.mrf.mxu0  ;;  %v323_v20 = vpop.f32.mrf.mxu1  ;;  %v476_v12 = vld [vmem:[%s4018_s3 + $0x490] sm:$0xff] }
 0x106   :  { %v253_v21 = vadd.f32 %v252_v19, %v171_v13  ;;  %v324_v22 = vadd.f32 %v323_v20, %v179_v14  ;;  %v328_v23 = vmax.f32 %v2630_v17, 0.0  ;;  %v326_v26 = vmax.f32 %v2632_v18, 0.0  ;;  %v345_v13 = vld [vmem:[%s4018_s3 + $0x78] sm:$0xff]  ;;  %v344_v15 = vld [vmem:[%s4018_s3 + $0x70] sm:$0xff]  ;;  %v944_v17 = vld [vmem:[%s4020_s5 + $0x1a0] sm:$0xff] }
 0x107   :  { %v473_v14 = vld [vmem:[%s4018_s3 + $0x478] sm:$0xff]  ;;  %v472_v16 = vld [vmem:[%s4018_s3 + $0x470] sm:$0xff]  ;;  %v941_v18 = vld [vmem:[%s4020_s5 + $0x188] sm:$0xff] }
 0x108   :  { %v327_v24 = vmax.f32 %v253_v21, 0.0  ;;  %v329_v25 = vmax.f32 %v324_v22, 0.0  ;;  %v341_v19 = vld [vmem:[%s4018_s3 + $0x58] sm:$0xff]  ;;  %v340_v21 = vld [vmem:[%s4018_s3 + $0x50] sm:$0xff] }
 0x109   :  { %v469_v20 = vld [vmem:[%s4018_s3 + $0x458] sm:$0xff]  ;;  %v468_v22 = vld [vmem:[%s4018_s3 + $0x450] sm:$0xff] }
 0x10a   :  { %672 = vmatprep.mubr.f32.mxu0 %v327_v24  ;;  %743 = vmatprep.mubr.f32.mxu1 %v329_v25 }
 0x10b   :  { %673 = vmatmul.mubr.f32.vlgmr.msra.gmra.mxu0 %v326_v26  ;;  %744 = vmatmul.mubr.f32.vlgmr.msra.gmra.mxu1 %v328_v23 }
 0x10c   :  { %751 = vmatpush1.msra.mxu0 %v392_v27  ;;  %822 = vmatpush1.msra.mxu1 %v520_v28  ;;  %v336_v27 = vld [vmem:[%s4018_s3 + $0x30] sm:$0xff] }
 0x10d   :  { %752 = vmatprep.subr.mxu0 %v389_v29  ;;  %814 = vmatprep.mubr.f32.mxu0 %v327_v24  ;;  %v337_v24 = vld [vmem:[%s4018_s3 + $0x38] sm:$0xff]  ;;  %v464_v28 = vld [vmem:[%s4018_s3 + $0x430] sm:$0xff] }
 0x10e   :  { %823 = vmatprep.subr.mxu1 %v517_v30  ;;  %885 = vmatprep.mubr.f32.mxu1 %v329_v25  ;;  %v465_v25 = vld [vmem:[%s4018_s3 + $0x438] sm:$0xff] }
 0x10f   :  { %753 = vmatpush1.msra.mxu0 %v388_v31  ;;  %824 = vmatpush1.msra.mxu1 %v516_v32  ;;  %v333_v29 = vld [vmem:[%s4018_s3 + $0x18] sm:$0xff]  ;;  %v332_v31 = vld [vmem:[%s4018_s3 + $0x10] sm:$0xff] }
 0x110   :  { %754 = vmatprep.subr.mxu0 %v385_v33  ;;  %825 = vmatprep.subr.mxu1 %v513_v34  ;;  %v461_v30 = vld [vmem:[%s4018_s3 + $0x418] sm:$0xff]  ;;  %v460_v32 = vld [vmem:[%s4018_s3 + $0x410] sm:$0xff] }
 0x111   :  { %755 = vmatpush1.msra.mxu0 %v384_v35  ;;  %826 = vmatpush1.msra.mxu1 %v512_v36  ;;  %v457_v33 = vld [vmem:[%s4018_s3 + $0x3f8] sm:$0xff]  ;;  %v456_v35 = vld [vmem:[%s4018_s3 + $0x3f0] sm:$0xff] }
 0x112   :  { %756 = vmatprep.subr.mxu0 %v381_v37  ;;  %827 = vmatprep.subr.mxu1 %v509_v38  ;;  %v585_v34 = vld [vmem:[%s4018_s3 + $0x7f8] sm:$0xff]  ;;  %v584_v36 = vld [vmem:[%s4018_s3 + $0x7f0] sm:$0xff] }
 0x113   :  { %757 = vmatpush1.msra.mxu0 %v380_v39  ;;  %828 = vmatpush1.msra.mxu1 %v508_v40  ;;  %v453_v37 = vld [vmem:[%s4018_s3 + $0x3d8] sm:$0xff]  ;;  %v452_v39 = vld [vmem:[%s4018_s3 + $0x3d0] sm:$0xff] }
 0x114   :  { %758 = vmatprep.subr.mxu0 %v377_v41  ;;  %829 = vmatprep.subr.mxu1 %v505_v42  ;;  %v581_v38 = vld [vmem:[%s4018_s3 + $0x7d8] sm:$0xff]  ;;  %v580_v40 = vld [vmem:[%s4018_s3 + $0x7d0] sm:$0xff] }
 0x115   :  { %759 = vmatpush1.msra.mxu0 %v376_v43  ;;  %830 = vmatpush1.msra.mxu1 %v504_v44  ;;  %v449_v41 = vld [vmem:[%s4018_s3 + $0x3b8] sm:$0xff]  ;;  %v448_v43 = vld [vmem:[%s4018_s3 + $0x3b0] sm:$0xff] }
 0x116   :  { %760 = vmatprep.subr.mxu0 %v373_v45  ;;  %831 = vmatprep.subr.mxu1 %v501_v46  ;;  %v577_v42 = vld [vmem:[%s4018_s3 + $0x7b8] sm:$0xff]  ;;  %v576_v44 = vld [vmem:[%s4018_s3 + $0x7b0] sm:$0xff] }
 0x117   :  { %761 = vmatpush1.msra.mxu0 %v372_v47  ;;  %832 = vmatpush1.msra.mxu1 %v500_v48  ;;  %v445_v45 = vld [vmem:[%s4018_s3 + $0x398] sm:$0xff]  ;;  %v444_v47 = vld [vmem:[%s4018_s3 + $0x390] sm:$0xff] }
 0x118   :  { %762 = vmatprep.subr.mxu0 %v369_v49  ;;  %833 = vmatprep.subr.mxu1 %v497_v50  ;;  %v573_v46 = vld [vmem:[%s4018_s3 + $0x798] sm:$0xff]  ;;  %v572_v48 = vld [vmem:[%s4018_s3 + $0x790] sm:$0xff] }
 0x119   :  { %763 = vmatpush1.msra.mxu0 %v368_v51  ;;  %834 = vmatpush1.msra.mxu1 %v496_v52  ;;  %v441_v49 = vld [vmem:[%s4018_s3 + $0x378] sm:$0xff]  ;;  %v440_v51 = vld [vmem:[%s4018_s3 + $0x370] sm:$0xff] }
 0x11a   :  { %764 = vmatprep.subr.mxu0 %v365_v53  ;;  %835 = vmatprep.subr.mxu1 %v493_v54  ;;  %v569_v50 = vld [vmem:[%s4018_s3 + $0x778] sm:$0xff]  ;;  %v568_v52 = vld [vmem:[%s4018_s3 + $0x770] sm:$0xff] }
 0x11b   :  { %765 = vmatpush1.msra.mxu0 %v364_v55  ;;  %836 = vmatpush1.msra.mxu1 %v492_v56  ;;  %v437_v53 = vld [vmem:[%s4018_s3 + $0x358] sm:$0xff]  ;;  %v436_v55 = vld [vmem:[%s4018_s3 + $0x350] sm:$0xff] }
 0x11c   :  { %766 = vmatprep.subr.mxu0 %v361_v57  ;;  %837 = vmatprep.subr.mxu1 %v489_v58  ;;  %v565_v54 = vld [vmem:[%s4018_s3 + $0x758] sm:$0xff]  ;;  %v564_v56 = vld [vmem:[%s4018_s3 + $0x750] sm:$0xff] }
 0x11d   :  { %767 = vmatpush1.msra.mxu0 %v360_v59  ;;  %838 = vmatpush1.msra.mxu1 %v488_v60  ;;  %v433_v57 = vld [vmem:[%s4018_s3 + $0x338] sm:$0xff]  ;;  %v432_v59 = vld [vmem:[%s4018_s3 + $0x330] sm:$0xff] }
 0x11e   :  { %768 = vmatprep.subr.mxu0 %v357_v61  ;;  %839 = vmatprep.subr.mxu1 %v485_v62  ;;  %v561_v58 = vld [vmem:[%s4018_s3 + $0x738] sm:$0xff]  ;;  %v560_v60 = vld [vmem:[%s4018_s3 + $0x730] sm:$0xff] }
 0x11f   :  { %769 = vmatpush1.msra.mxu0 %v356_v63  ;;  %840 = vmatpush1.msra.mxu1 %v484_v0  ;;  %v429_v61 = vld [vmem:[%s4018_s3 + $0x318] sm:$0xff]  ;;  %v428_v63 = vld [vmem:[%s4018_s3 + $0x310] sm:$0xff] }
 0x120   :  { %770 = vmatprep.subr.mxu0 %v353_v1  ;;  %841 = vmatprep.subr.mxu1 %v481_v2  ;;  %v557_v62 = vld [vmem:[%s4018_s3 + $0x718] sm:$0xff]  ;;  %v556_v0 = vld [vmem:[%s4018_s3 + $0x710] sm:$0xff] }
 0x121   :  { %771 = vmatpush1.msra.mxu0 %v352_v3  ;;  %842 = vmatpush1.msra.mxu1 %v480_v4  ;;  %v425_v1 = vld [vmem:[%s4018_s3 + $0x2f8] sm:$0xff]  ;;  %v424_v3 = vld [vmem:[%s4018_s3 + $0x2f0] sm:$0xff] }
 0x122   :  { %772 = vmatprep.subr.mxu0 %v349_v5  ;;  %843 = vmatprep.subr.mxu1 %v477_v8  ;;  %v553_v2 = vld [vmem:[%s4018_s3 + $0x6f8] sm:$0xff]  ;;  %v552_v4 = vld [vmem:[%s4018_s3 + $0x6f0] sm:$0xff] }
 0x123   :  { %773 = vmatpush1.msra.mxu0 %v348_v11  ;;  %844 = vmatpush1.msra.mxu1 %v476_v12  ;;  %v421_v5 = vld [vmem:[%s4018_s3 + $0x2d8] sm:$0xff]  ;;  %v420_v11 = vld [vmem:[%s4018_s3 + $0x2d0] sm:$0xff] }
 0x124   :  { %774 = vmatprep.subr.mxu0 %v345_v13  ;;  %845 = vmatprep.subr.mxu1 %v473_v14  ;;  %v549_v8 = vld [vmem:[%s4018_s3 + $0x6d8] sm:$0xff]  ;;  %v548_v12 = vld [vmem:[%s4018_s3 + $0x6d0] sm:$0xff] }
 0x125   :  { %775 = vmatpush1.msra.mxu0 %v344_v15  ;;  %846 = vmatpush1.msra.mxu1 %v472_v16  ;;  %v417_v13 = vld [vmem:[%s4018_s3 + $0x2b8] sm:$0xff]  ;;  %v416_v15 = vld [vmem:[%s4018_s3 + $0x2b0] sm:$0xff] }
 0x126   :  { %776 = vmatprep.subr.mxu0 %v341_v19  ;;  %847 = vmatprep.subr.mxu1 %v469_v20  ;;  %v545_v14 = vld [vmem:[%s4018_s3 + $0x6b8] sm:$0xff]  ;;  %v544_v16 = vld [vmem:[%s4018_s3 + $0x6b0] sm:$0xff] }
 0x127   :  { %777 = vmatpush1.msra.mxu0 %v340_v21  ;;  %848 = vmatpush1.msra.mxu1 %v468_v22  ;;  %v413_v19 = vld [vmem:[%s4018_s3 + $0x298] sm:$0xff]  ;;  %v412_v21 = vld [vmem:[%s4018_s3 + $0x290] sm:$0xff] }
 0x128   :  { %778 = vmatprep.subr.mxu0 %v337_v24  ;;  %849 = vmatprep.subr.mxu1 %v465_v25  ;;  %v541_v20 = vld [vmem:[%s4018_s3 + $0x698] sm:$0xff]  ;;  %v540_v22 = vld [vmem:[%s4018_s3 + $0x690] sm:$0xff] }
 0x129   :  { %779 = vmatpush1.msra.mxu0 %v336_v27  ;;  %850 = vmatpush1.msra.mxu1 %v464_v28  ;;  %v409_v24 = vld [vmem:[%s4018_s3 + $0x278] sm:$0xff]  ;;  %v408_v27 = vld [vmem:[%s4018_s3 + $0x270] sm:$0xff] }
 0x12a   :  { %780 = vmatprep.subr.mxu0 %v333_v29  ;;  %851 = vmatprep.subr.mxu1 %v461_v30  ;;  %v537_v25 = vld [vmem:[%s4018_s3 + $0x678] sm:$0xff]  ;;  %v536_v28 = vld [vmem:[%s4018_s3 + $0x670] sm:$0xff] }
 0x12b   :  { %781 = vmatpush1.msra.mxu0 %v332_v31  ;;  %852 = vmatpush1.msra.mxu1 %v460_v32  ;;  %v405_v29 = vld [vmem:[%s4018_s3 + $0x258] sm:$0xff]  ;;  %v404_v31 = vld [vmem:[%s4018_s3 + $0x250] sm:$0xff] }
 0x12c   :  { %782 = vmatprep.subr.mxu0 %v457_v33  ;;  %853 = vmatprep.subr.mxu1 %v585_v34  ;;  %v533_v30 = vld [vmem:[%s4018_s3 + $0x658] sm:$0xff]  ;;  %v532_v32 = vld [vmem:[%s4018_s3 + $0x650] sm:$0xff] }
 0x12d   :  { %783 = vmatpush2.msra.mxu0 %v456_v35  ;;  %854 = vmatpush2.msra.mxu1 %v584_v36  ;;  %v401_v33 = vld [vmem:[%s4018_s3 + $0x238] sm:$0xff]  ;;  %v400_v35 = vld [vmem:[%s4018_s3 + $0x230] sm:$0xff] }
 0x12e   :  { %784 = vmatprep.subr.mxu0 %v453_v37  ;;  %855 = vmatprep.subr.mxu1 %v581_v38  ;;  %v529_v34 = vld [vmem:[%s4018_s3 + $0x638] sm:$0xff]  ;;  %v528_v36 = vld [vmem:[%s4018_s3 + $0x630] sm:$0xff] }
 0x12f   :  { %785 = vmatpush2.msra.mxu0 %v452_v39  ;;  %856 = vmatpush2.msra.mxu1 %v580_v40  ;;  %v397_v37 = vld [vmem:[%s4018_s3 + $0x218] sm:$0xff]  ;;  %v396_v39 = vld [vmem:[%s4018_s3 + $0x210] sm:$0xff] }
 0x130   :  { %786 = vmatprep.subr.mxu0 %v449_v41  ;;  %857 = vmatprep.subr.mxu1 %v577_v42  ;;  %v525_v38 = vld [vmem:[%s4018_s3 + $0x618] sm:$0xff]  ;;  %v524_v40 = vld [vmem:[%s4018_s3 + $0x610] sm:$0xff]  ;;  %v953_v41 = vld [vmem:[%s4020_s5 + $0x1e8] sm:$0xff] }
 0x131   :  { %787 = vmatpush2.msra.mxu0 %v448_v43  ;;  %858 = vmatpush2.msra.mxu1 %v576_v44  ;;  %v952_v42 = vld [vmem:[%s4020_s5 + $0x1e0] sm:$0xff]  ;;  %v949_v43 = vld [vmem:[%s4020_s5 + $0x1c8] sm:$0xff] }
 0x132   :  { %788 = vmatprep.subr.mxu0 %v445_v45  ;;  %859 = vmatprep.subr.mxu1 %v573_v46  ;;  %v948_v44 = vld [vmem:[%s4020_s5 + $0x1c0] sm:$0xff]  ;;  %v945_v45 = vld [vmem:[%s4020_s5 + $0x1a8] sm:$0xff] }
 0x133   :  { %789 = vmatpush2.msra.mxu0 %v444_v47  ;;  %860 = vmatpush2.msra.mxu1 %v572_v48  ;;  %v937_v46 = vld [vmem:[%s4020_s5 + $0x168] sm:$0xff]  ;;  %v1080_v47 = vld [vmem:[%s4020_s5 + $0x5e0] sm:$0xff] }
 0x134   :  { %790 = vmatprep.subr.mxu0 %v441_v49  ;;  %861 = vmatprep.subr.mxu1 %v569_v50  ;;  %v936_v48 = vld [vmem:[%s4020_s5 + $0x160] sm:$0xff]  ;;  %v1077_v49 = vld [vmem:[%s4020_s5 + $0x5c8] sm:$0xff] }
 0x135   :  { %791 = vmatpush2.msra.mxu0 %v440_v51  ;;  %862 = vmatpush2.msra.mxu1 %v568_v52  ;;  %v933_v50 = vld [vmem:[%s4020_s5 + $0x148] sm:$0xff]  ;;  %v1076_v51 = vld [vmem:[%s4020_s5 + $0x5c0] sm:$0xff] }
 0x136   :  { %792 = vmatprep.subr.mxu0 %v437_v53  ;;  %863 = vmatprep.subr.mxu1 %v565_v54  ;;  %v932_v52 = vld [vmem:[%s4020_s5 + $0x140] sm:$0xff]  ;;  %v1073_v53 = vld [vmem:[%s4020_s5 + $0x5a8] sm:$0xff] }
 0x137   :  { %793 = vmatpush2.msra.mxu0 %v436_v55  ;;  %864 = vmatpush2.msra.mxu1 %v564_v56  ;;  %v929_v54 = vld [vmem:[%s4020_s5 + $0x128] sm:$0xff]  ;;  %v1072_v55 = vld [vmem:[%s4020_s5 + $0x5a0] sm:$0xff] }
 0x138   :  { %794 = vmatprep.subr.mxu0 %v433_v57  ;;  %865 = vmatprep.subr.mxu1 %v561_v58  ;;  %v928_v56 = vld [vmem:[%s4020_s5 + $0x120] sm:$0xff]  ;;  %v1069_v57 = vld [vmem:[%s4020_s5 + $0x588] sm:$0xff] }
 0x139   :  { %795 = vmatpush2.msra.mxu0 %v432_v59  ;;  %866 = vmatpush2.msra.mxu1 %v560_v60  ;;  %v925_v58 = vld [vmem:[%s4020_s5 + $0x108] sm:$0xff]  ;;  %v1068_v59 = vld [vmem:[%s4020_s5 + $0x580] sm:$0xff] }
 0x13a   :  { %796 = vmatprep.subr.mxu0 %v429_v61  ;;  %867 = vmatprep.subr.mxu1 %v557_v62  ;;  %v924_v60 = vld [vmem:[%s4020_s5 + $0x100] sm:$0xff]  ;;  %v1065_v61 = vld [vmem:[%s4020_s5 + $0x568] sm:$0xff] }
 0x13b   :  { %797 = vmatpush2.msra.mxu0 %v428_v63  ;;  %868 = vmatpush2.msra.mxu1 %v556_v0  ;;  %v921_v62 = vld [vmem:[%s4020_s5 + $0xe8] sm:$0xff]  ;;  %v1064_v63 = vld [vmem:[%s4020_s5 + $0x560] sm:$0xff] }
 0x13c   :  { %798 = vmatprep.subr.mxu0 %v425_v1  ;;  %869 = vmatprep.subr.mxu1 %v553_v2  ;;  %v920_v0 = vld [vmem:[%s4020_s5 + $0xe0] sm:$0xff]  ;;  %v1061_v1 = vld [vmem:[%s4020_s5 + $0x548] sm:$0xff] }
 0x13d   :  { %799 = vmatpush2.msra.mxu0 %v424_v3  ;;  %870 = vmatpush2.msra.mxu1 %v552_v4  ;;  %v917_v2 = vld [vmem:[%s4020_s5 + $0xc8] sm:$0xff]  ;;  %v1060_v3 = vld [vmem:[%s4020_s5 + $0x540] sm:$0xff] }
 0x13e   :  { %800 = vmatprep.subr.mxu0 %v421_v5  ;;  %871 = vmatprep.subr.mxu1 %v549_v8  ;;  %v916_v4 = vld [vmem:[%s4020_s5 + $0xc0] sm:$0xff]  ;;  %v1057_v5 = vld [vmem:[%s4020_s5 + $0x528] sm:$0xff] }
 0x13f   :  { %801 = vmatpush2.msra.mxu0 %v420_v11  ;;  %872 = vmatpush2.msra.mxu1 %v548_v12  ;;  %v913_v8 = vld [vmem:[%s4020_s5 + $0xa8] sm:$0xff]  ;;  %v1056_v11 = vld [vmem:[%s4020_s5 + $0x520] sm:$0xff] }
 0x140   :  { %802 = vmatprep.subr.mxu0 %v417_v13  ;;  %873 = vmatprep.subr.mxu1 %v545_v14  ;;  %v912_v12 = vld [vmem:[%s4020_s5 + $0xa0] sm:$0xff]  ;;  %v1053_v13 = vld [vmem:[%s4020_s5 + $0x508] sm:$0xff] }
 0x141   :  { %803 = vmatpush2.msra.mxu0 %v416_v15  ;;  %874 = vmatpush2.msra.mxu1 %v544_v16  ;;  %v909_v14 = vld [vmem:[%s4020_s5 + $0x88] sm:$0xff]  ;;  %v1052_v15 = vld [vmem:[%s4020_s5 + $0x500] sm:$0xff] }
 0x142   :  { %804 = vmatprep.subr.mxu0 %v413_v19  ;;  %875 = vmatprep.subr.mxu1 %v541_v20  ;;  %v908_v16 = vld [vmem:[%s4020_s5 + $0x80] sm:$0xff]  ;;  %v1049_v19 = vld [vmem:[%s4020_s5 + $0x4e8] sm:$0xff] }
 0x143   :  { %805 = vmatpush2.msra.mxu0 %v412_v21  ;;  %876 = vmatpush2.msra.mxu1 %v540_v22  ;;  %v905_v20 = vld [vmem:[%s4020_s5 + $0x68] sm:$0xff]  ;;  %v1048_v21 = vld [vmem:[%s4020_s5 + $0x4e0] sm:$0xff] }
 0x144   :  { %806 = vmatprep.subr.mxu0 %v409_v24  ;;  %877 = vmatprep.subr.mxu1 %v537_v25  ;;  %v904_v22 = vld [vmem:[%s4020_s5 + $0x60] sm:$0xff]  ;;  %v1045_v24 = vld [vmem:[%s4020_s5 + $0x4c8] sm:$0xff] }
 0x145   :  { %807 = vmatpush2.msra.mxu0 %v408_v27  ;;  %878 = vmatpush2.msra.mxu1 %v536_v28  ;;  %v901_v25 = vld [vmem:[%s4020_s5 + $0x48] sm:$0xff]  ;;  %v1044_v27 = vld [vmem:[%s4020_s5 + $0x4c0] sm:$0xff] }
 0x146   :  { %808 = vmatprep.subr.mxu0 %v405_v29  ;;  %879 = vmatprep.subr.mxu1 %v533_v30  ;;  %v900_v28 = vld [vmem:[%s4020_s5 + $0x40] sm:$0xff]  ;;  %v1041_v29 = vld [vmem:[%s4020_s5 + $0x4a8] sm:$0xff] }
 0x147   :  { %809 = vmatpush2.msra.mxu0 %v404_v31  ;;  %880 = vmatpush2.msra.mxu1 %v532_v32  ;;  %v897_v30 = vld [vmem:[%s4020_s5 + $0x28] sm:$0xff]  ;;  %v1040_v31 = vld [vmem:[%s4020_s5 + $0x4a0] sm:$0xff] }
 0x148   :  { %810 = vmatprep.subr.mxu0 %v401_v33  ;;  %881 = vmatprep.subr.mxu1 %v529_v34  ;;  %v896_v32 = vld [vmem:[%s4020_s5 + $0x20] sm:$0xff]  ;;  %v1037_v33 = vld [vmem:[%s4020_s5 + $0x488] sm:$0xff] }
 0x149   :  { %811 = vmatpush2.msra.mxu0 %v400_v35  ;;  %882 = vmatpush2.msra.mxu1 %v528_v36  ;;  %v893_v34 = vld [vmem:[%s4020_s5 + $0x8] sm:$0xff]  ;;  %v1036_v35 = vld [vmem:[%s4020_s5 + $0x480] sm:$0xff] }
 0x14a   :  { %812 = vmatprep.subr.mxu0 %v397_v37  ;;  %883 = vmatprep.subr.mxu1 %v525_v38  ;;  %v892_v36 = vld [vmem:[%s4020_s5] sm:$0xff]  ;;  %v1033_v37 = vld [vmem:[%s4020_s5 + $0x468] sm:$0xff] }
 0x14b   :  { %813 = vmatpush2.msra.mxu0 %v396_v39  ;;  %884 = vmatpush2.msra.mxu1 %v524_v40  ;;  %v1017_v38 = vld [vmem:[%s4020_s5 + $0x3e8] sm:$0xff]  ;;  %v1032_v39 = vld [vmem:[%s4020_s5 + $0x460] sm:$0xff] }
 0x14c   :  { %815 = vmatmul.mubr.f32.vlgmr.msra.gmra.mxu0 %v326_v26  ;;  %886 = vmatmul.mubr.f32.vlgmr.msra.gmra.mxu1 %v328_v23  ;;  %v940_v23 = vld [vmem:[%s4020_s5 + $0x180] sm:$0xff]  ;;  %v1081_v26 = vld [vmem:[%s4020_s5 + $0x5e8] sm:$0xff] }
 0x14d   :  { %1170 = vmatprep.subr.mxu0 %v953_v41  ;;  %1241 = vmatprep.subr.mxu1 %v1081_v26  ;;  %v1016_v40 = vld [vmem:[%s4020_s5 + $0x3e0] sm:$0xff]  ;;  %v1029_v41 = vld [vmem:[%s4020_s5 + $0x448] sm:$0xff] }
 0x14e   :  { %1171 = vmatpush1.msra.mxu0 %v952_v42  ;;  %1242 = vmatpush1.msra.mxu1 %v1080_v47  ;;  %v1013_v42 = vld [vmem:[%s4020_s5 + $0x3c8] sm:$0xff]  ;;  %v1020_v47 = vld [vmem:[%s4020_s5 + $0x400] sm:$0xff] }
 0x14f   :  { %1172 = vmatprep.subr.mxu0 %v949_v43  ;;  %1243 = vmatprep.subr.mxu1 %v1077_v49  ;;  %v1028_v43 = vld [vmem:[%s4020_s5 + $0x440] sm:$0xff]  ;;  %v1021_v26 = vld [vmem:[%s4020_s5 + $0x408] sm:$0xff] }
 0x150   :  { %1173 = vmatpush1.msra.mxu0 %v948_v44  ;;  %1244 = vmatpush1.msra.mxu1 %v1076_v51  ;;  %v1012_v44 = vld [vmem:[%s4020_s5 + $0x3c0] sm:$0xff]  ;;  %v1145_v49 = vld [vmem:[%s4020_s5 + $0x7e8] sm:$0xff] }
 0x151   :  { %1174 = vmatprep.subr.mxu0 %v945_v45  ;;  %1245 = vmatprep.subr.mxu1 %v1073_v53  ;;  %v1025_v45 = vld [vmem:[%s4020_s5 + $0x428] sm:$0xff]  ;;  %v1144_v51 = vld [vmem:[%s4020_s5 + $0x7e0] sm:$0xff] }
 0x152   :  { %1175 = vmatpush1.msra.mxu0 %v944_v17  ;;  %1246 = vmatpush1.msra.mxu1 %v1072_v55  ;;  %v1009_v17 = vld [vmem:[%s4020_s5 + $0x3a8] sm:$0xff]  ;;  %v1140_v55 = vld [vmem:[%s4020_s5 + $0x7c0] sm:$0xff] }
 0x153   :  { %1176 = vmatprep.subr.mxu0 %v941_v18  ;;  %1247 = vmatprep.subr.mxu1 %v1069_v57  ;;  %v1024_v18 = vld [vmem:[%s4020_s5 + $0x420] sm:$0xff]  ;;  %v1141_v53 = vld [vmem:[%s4020_s5 + $0x7c8] sm:$0xff] }
 0x154   :  { %1177 = vmatpush1.msra.mxu0 %v940_v23  ;;  %1248 = vmatpush1.msra.mxu1 %v1068_v59  ;;  %v1008_v23 = vld [vmem:[%s4020_s5 + $0x3a0] sm:$0xff]  ;;  %v1137_v57 = vld [vmem:[%s4020_s5 + $0x7a8] sm:$0xff] }
 0x155   :  { %1178 = vmatprep.subr.mxu0 %v937_v46  ;;  %1249 = vmatprep.subr.mxu1 %v1065_v61  ;;  %v1005_v46 = vld [vmem:[%s4020_s5 + $0x388] sm:$0xff]  ;;  %v1136_v59 = vld [vmem:[%s4020_s5 + $0x7a0] sm:$0xff] }
 0x156   :  { %1179 = vmatpush1.msra.mxu0 %v936_v48  ;;  %1250 = vmatpush1.msra.mxu1 %v1064_v63  ;;  %v1004_v48 = vld [vmem:[%s4020_s5 + $0x380] sm:$0xff]  ;;  %v1133_v61 = vld [vmem:[%s4020_s5 + $0x788] sm:$0xff] }
 0x157   :  { %1180 = vmatprep.subr.mxu0 %v933_v50  ;;  %1251 = vmatprep.subr.mxu1 %v1061_v1  ;;  %v1001_v50 = vld [vmem:[%s4020_s5 + $0x368] sm:$0xff]  ;;  %v1132_v63 = vld [vmem:[%s4020_s5 + $0x780] sm:$0xff] }
 0x158   :  { %1181 = vmatpush1.msra.mxu0 %v932_v52  ;;  %1252 = vmatpush1.msra.mxu1 %v1060_v3  ;;  %v1000_v52 = vld [vmem:[%s4020_s5 + $0x360] sm:$0xff]  ;;  %v1129_v1 = vld [vmem:[%s4020_s5 + $0x768] sm:$0xff] }
 0x159   :  { %1182 = vmatprep.subr.mxu0 %v929_v54  ;;  %1253 = vmatprep.subr.mxu1 %v1057_v5  ;;  %v997_v54 = vld [vmem:[%s4020_s5 + $0x348] sm:$0xff]  ;;  %v1128_v3 = vld [vmem:[%s4020_s5 + $0x760] sm:$0xff] }
 0x15a   :  { %1183 = vmatpush1.msra.mxu0 %v928_v56  ;;  %1254 = vmatpush1.msra.mxu1 %v1056_v11  ;;  %v996_v56 = vld [vmem:[%s4020_s5 + $0x340] sm:$0xff]  ;;  %v1125_v5 = vld [vmem:[%s4020_s5 + $0x748] sm:$0xff] }
 0x15b   :  { %1184 = vmatprep.subr.mxu0 %v925_v58  ;;  %1255 = vmatprep.subr.mxu1 %v1053_v13  ;;  %v993_v58 = vld [vmem:[%s4020_s5 + $0x328] sm:$0xff]  ;;  %v1124_v11 = vld [vmem:[%s4020_s5 + $0x740] sm:$0xff] }
 0x15c   :  { %1185 = vmatpush1.msra.mxu0 %v924_v60  ;;  %1256 = vmatpush1.msra.mxu1 %v1052_v15  ;;  %v992_v60 = vld [vmem:[%s4020_s5 + $0x320] sm:$0xff]  ;;  %v1121_v13 = vld [vmem:[%s4020_s5 + $0x728] sm:$0xff] }
 0x15d   :  { %1186 = vmatprep.subr.mxu0 %v921_v62  ;;  %1257 = vmatprep.subr.mxu1 %v1049_v19  ;;  %v989_v62 = vld [vmem:[%s4020_s5 + $0x308] sm:$0xff]  ;;  %v1120_v15 = vld [vmem:[%s4020_s5 + $0x720] sm:$0xff] }
 0x15e   :  { %1187 = vmatpush1.msra.mxu0 %v920_v0  ;;  %1258 = vmatpush1.msra.mxu1 %v1048_v21  ;;  %v988_v0 = vld [vmem:[%s4020_s5 + $0x300] sm:$0xff]  ;;  %v1117_v19 = vld [vmem:[%s4020_s5 + $0x708] sm:$0xff] }
 0x15f   :  { %1188 = vmatprep.subr.mxu0 %v917_v2  ;;  %1259 = vmatprep.subr.mxu1 %v1045_v24  ;;  %v985_v2 = vld [vmem:[%s4020_s5 + $0x2e8] sm:$0xff]  ;;  %v1116_v21 = vld [vmem:[%s4020_s5 + $0x700] sm:$0xff] }
 0x160   :  { %1189 = vmatpush1.msra.mxu0 %v916_v4  ;;  %1260 = vmatpush1.msra.mxu1 %v1044_v27  ;;  %v984_v4 = vld [vmem:[%s4020_s5 + $0x2e0] sm:$0xff]  ;;  %v1113_v24 = vld [vmem:[%s4020_s5 + $0x6e8] sm:$0xff] }
 0x161   :  { %1190 = vmatprep.subr.mxu0 %v913_v8  ;;  %1261 = vmatprep.subr.mxu1 %v1041_v29  ;;  %v981_v8 = vld [vmem:[%s4020_s5 + $0x2c8] sm:$0xff]  ;;  %v1112_v27 = vld [vmem:[%s4020_s5 + $0x6e0] sm:$0xff] }
 0x162   :  { %1191 = vmatpush1.msra.mxu0 %v912_v12  ;;  %1262 = vmatpush1.msra.mxu1 %v1040_v31  ;;  %v980_v12 = vld [vmem:[%s4020_s5 + $0x2c0] sm:$0xff]  ;;  %v1109_v29 = vld [vmem:[%s4020_s5 + $0x6c8] sm:$0xff] }
 0x163   :  { %1192 = vmatprep.subr.mxu0 %v909_v14  ;;  %1263 = vmatprep.subr.mxu1 %v1037_v33  ;;  %v977_v14 = vld [vmem:[%s4020_s5 + $0x2a8] sm:$0xff]  ;;  %v1108_v31 = vld [vmem:[%s4020_s5 + $0x6c0] sm:$0xff] }
 0x164   :  { %1193 = vmatpush1.msra.mxu0 %v908_v16  ;;  %1264 = vmatpush1.msra.mxu1 %v1036_v35  ;;  %v976_v16 = vld [vmem:[%s4020_s5 + $0x2a0] sm:$0xff]  ;;  %v1105_v33 = vld [vmem:[%s4020_s5 + $0x6a8] sm:$0xff] }
 0x165   :  { %1194 = vmatprep.subr.mxu0 %v905_v20  ;;  %1265 = vmatprep.subr.mxu1 %v1033_v37  ;;  %v973_v20 = vld [vmem:[%s4020_s5 + $0x288] sm:$0xff]  ;;  %v1104_v35 = vld [vmem:[%s4020_s5 + $0x6a0] sm:$0xff] }
 0x166   :  { %1195 = vmatpush1.msra.mxu0 %v904_v22  ;;  %1266 = vmatpush1.msra.mxu1 %v1032_v39  ;;  %v972_v22 = vld [vmem:[%s4020_s5 + $0x280] sm:$0xff]  ;;  %v1101_v37 = vld [vmem:[%s4020_s5 + $0x688] sm:$0xff] }
 0x167   :  { %1196 = vmatprep.subr.mxu0 %v901_v25  ;;  %1267 = vmatprep.subr.mxu1 %v1029_v41  ;;  %v969_v25 = vld [vmem:[%s4020_s5 + $0x268] sm:$0xff]  ;;  %v1100_v39 = vld [vmem:[%s4020_s5 + $0x680] sm:$0xff] }
 0x168   :  { %1197 = vmatpush1.msra.mxu0 %v900_v28  ;;  %1268 = vmatpush1.msra.mxu1 %v1028_v43  ;;  %v968_v28 = vld [vmem:[%s4020_s5 + $0x260] sm:$0xff]  ;;  %v1097_v41 = vld [vmem:[%s4020_s5 + $0x668] sm:$0xff] }
 0x169   :  { %1198 = vmatprep.subr.mxu0 %v897_v30  ;;  %1269 = vmatprep.subr.mxu1 %v1025_v45  ;;  %v965_v30 = vld [vmem:[%s4020_s5 + $0x248] sm:$0xff]  ;;  %v1096_v43 = vld [vmem:[%s4020_s5 + $0x660] sm:$0xff] }
 0x16a   :  { %1199 = vmatpush1.msra.mxu0 %v896_v32  ;;  %1270 = vmatpush1.msra.mxu1 %v1024_v18  ;;  %v964_v32 = vld [vmem:[%s4020_s5 + $0x240] sm:$0xff] }
 0x16b   :  { %1200 = vmatprep.subr.mxu0 %v893_v34  ;;  %1271 = vmatprep.subr.mxu1 %v1021_v26  ;;  %v961_v34 = vld [vmem:[%s4020_s5 + $0x228] sm:$0xff]  ;;  %v1092_v45 = vld [vmem:[%s4020_s5 + $0x640] sm:$0xff] }
 0x16c   :  { %1201 = vmatpush1.msra.mxu0 %v892_v36  ;;  %1272 = vmatpush1.msra.mxu1 %v1020_v47  ;;  %v960_v36 = vld [vmem:[%s4020_s5 + $0x220] sm:$0xff] }
 0x16d   :  { %1202 = vmatprep.subr.mxu0 %v1017_v38  ;;  %1273 = vmatprep.subr.mxu1 %v1145_v49  ;;  %v957_v38 = vld [vmem:[%s4020_s5 + $0x208] sm:$0xff]  ;;  %v1088_v18 = vld [vmem:[%s4020_s5 + $0x620] sm:$0xff] }
 0x16e   :  { %1203 = vmatpush2.msra.mxu0 %v1016_v40  ;;  %1274 = vmatpush2.msra.mxu1 %v1144_v51  ;;  %v956_v40 = vld [vmem:[%s4020_s5 + $0x200] sm:$0xff] }
 0x16f   :  { %1204 = vmatprep.subr.mxu0 %v1013_v42  ;;  %1275 = vmatprep.subr.mxu1 %v1141_v53  ;;  %v955_v42 = vld [vmem:[%s4020_s5 + $0x1f8] sm:$0xff]  ;;  %v1084_v26 = vld [vmem:[%s4020_s5 + $0x600] sm:$0xff] }
 0x170   :  { %1205 = vmatpush2.msra.mxu0 %v1012_v44  ;;  %1276 = vmatpush2.msra.mxu1 %v1140_v55  ;;  %v1093_v44 = vld [vmem:[%s4020_s5 + $0x648] sm:$0xff]  ;;  %v3415_v47 = vld [vmem:[%s4021_s4] sm:$0xf] }
 0x171   :  { %1206 = vmatprep.subr.mxu0 %v1009_v17  ;;  %1277 = vmatprep.subr.mxu1 %v1137_v57  ;;  %v1089_v17 = vld [vmem:[%s4020_s5 + $0x628] sm:$0xff]  ;;  %v595_v49 = vrot.slane %v3415_v47, %v2622_v9 }
 0x172   :  { %1207 = vmatpush2.msra.mxu0 %v1008_v23  ;;  %1278 = vmatpush2.msra.mxu1 %v1136_v59  ;;  %v1085_v23 = vld [vmem:[%s4020_s5 + $0x608] sm:$0xff]  ;;  %v951_v59 = vld [vmem:[%s4020_s5 + $0x1d8] sm:$0xff] }
 0x173   :  { %1208 = vmatprep.subr.mxu0 %v1005_v46  ;;  %1279 = vmatprep.subr.mxu1 %v1133_v61  ;;  %v1083_v46 = vld [vmem:[%s4020_s5 + $0x5f8] sm:$0xff] }
 0x174   :  { %1209 = vmatpush2.msra.mxu0 %v1004_v48  ;;  %1280 = vmatpush2.msra.mxu1 %v1132_v63  ;;  %v591_v48 = vrot.slane %v3415_v47, %v2617_v7  ;;  %v947_v61 = vld [vmem:[%s4020_s5 + $0x1b8] sm:$0xff] }
 0x175   :  { %1210 = vmatprep.subr.mxu0 %v1001_v50  ;;  %1281 = vmatprep.subr.mxu1 %v1129_v1  ;;  %v943_v63 = vld [vmem:[%s4020_s5 + $0x198] sm:$0xff] }
 0x176   :  { %1211 = vmatpush2.msra.mxu0 %v1000_v52  ;;  %1282 = vmatpush2.msra.mxu1 %v1128_v3  ;;  %v939_v1 = vld [vmem:[%s4020_s5 + $0x178] sm:$0xff] }
 0x177   :  { %1212 = vmatprep.subr.mxu0 %v997_v54  ;;  %1283 = vmatprep.subr.mxu1 %v1125_v5  ;;  %v935_v3 = vld [vmem:[%s4020_s5 + $0x158] sm:$0xff] }
 0x178   :  { %1213 = vmatpush2.msra.mxu0 %v996_v56  ;;  %1284 = vmatpush2.msra.mxu1 %v1124_v11  ;;  %v931_v5 = vld [vmem:[%s4020_s5 + $0x138] sm:$0xff] }
 0x179   :  { %1214 = vmatprep.subr.mxu0 %v993_v58  ;;  %1285 = vmatprep.subr.mxu1 %v1121_v13  ;;  %v954_v58 = vld [vmem:[%s4020_s5 + $0x1f0] sm:$0xff]  ;;  %v927_v11 = vld [vmem:[%s4020_s5 + $0x118] sm:$0xff] }
 0x17a   :  { %1215 = vmatpush2.msra.mxu0 %v992_v60  ;;  %1286 = vmatpush2.msra.mxu1 %v1120_v15  ;;  %v950_v60 = vld [vmem:[%s4020_s5 + $0x1d0] sm:$0xff]  ;;  %v923_v13 = vld [vmem:[%s4020_s5 + $0xf8] sm:$0xff] }
 0x17b   :  { %1216 = vmatprep.subr.mxu0 %v989_v62  ;;  %1287 = vmatprep.subr.mxu1 %v1117_v19  ;;  %v946_v62 = vld [vmem:[%s4020_s5 + $0x1b0] sm:$0xff]  ;;  %v919_v15 = vld [vmem:[%s4020_s5 + $0xd8] sm:$0xff] }
 0x17c   :  { %1217 = vmatpush2.msra.mxu0 %v988_v0  ;;  %1288 = vmatpush2.msra.mxu1 %v1116_v21  ;;  %v942_v0 = vld [vmem:[%s4020_s5 + $0x190] sm:$0xff]  ;;  %v915_v19 = vld [vmem:[%s4020_s5 + $0xb8] sm:$0xff] }
 0x17d   :  { %1218 = vmatprep.subr.mxu0 %v985_v2  ;;  %1289 = vmatprep.subr.mxu1 %v1113_v24  ;;  %v938_v2 = vld [vmem:[%s4020_s5 + $0x170] sm:$0xff]  ;;  %v911_v21 = vld [vmem:[%s4020_s5 + $0x98] sm:$0xff] }
 0x17e   :  { %1219 = vmatpush2.msra.mxu0 %v984_v4  ;;  %1290 = vmatpush2.msra.mxu1 %v1112_v27  ;;  %v934_v4 = vld [vmem:[%s4020_s5 + $0x150] sm:$0xff]  ;;  %v907_v24 = vld [vmem:[%s4020_s5 + $0x78] sm:$0xff] }
 0x17f   :  { %1220 = vmatprep.subr.mxu0 %v981_v8  ;;  %1291 = vmatprep.subr.mxu1 %v1109_v29  ;;  %v930_v8 = vld [vmem:[%s4020_s5 + $0x130] sm:$0xff]  ;;  %v903_v27 = vld [vmem:[%s4020_s5 + $0x58] sm:$0xff] }
 0x180   :  { %1221 = vmatpush2.msra.mxu0 %v980_v12  ;;  %1292 = vmatpush2.msra.mxu1 %v1108_v31  ;;  %v926_v12 = vld [vmem:[%s4020_s5 + $0x110] sm:$0xff]  ;;  %v899_v29 = vld [vmem:[%s4020_s5 + $0x38] sm:$0xff] }
 0x181   :  { %1222 = vmatprep.subr.mxu0 %v977_v14  ;;  %1293 = vmatprep.subr.mxu1 %v1105_v33  ;;  %v922_v14 = vld [vmem:[%s4020_s5 + $0xf0] sm:$0xff]  ;;  %v895_v31 = vld [vmem:[%s4020_s5 + $0x18] sm:$0xff] }
 0x182   :  { %1223 = vmatpush2.msra.mxu0 %v976_v16  ;;  %1294 = vmatpush2.msra.mxu1 %v1104_v35  ;;  %v918_v16 = vld [vmem:[%s4020_s5 + $0xd0] sm:$0xff]  ;;  %v1019_v33 = vld [vmem:[%s4020_s5 + $0x3f8] sm:$0xff] }
 0x183   :  { %1224 = vmatprep.subr.mxu0 %v973_v20  ;;  %1295 = vmatprep.subr.mxu1 %v1101_v37  ;;  %v914_v20 = vld [vmem:[%s4020_s5 + $0xb0] sm:$0xff]  ;;  %v1015_v35 = vld [vmem:[%s4020_s5 + $0x3d8] sm:$0xff] }
 0x184   :  { %1225 = vmatpush2.msra.mxu0 %v972_v22  ;;  %1296 = vmatpush2.msra.mxu1 %v1100_v39  ;;  %v910_v22 = vld [vmem:[%s4020_s5 + $0x90] sm:$0xff]  ;;  %v1011_v37 = vld [vmem:[%s4020_s5 + $0x3b8] sm:$0xff] }
 0x185   :  { %1226 = vmatprep.subr.mxu0 %v969_v25  ;;  %1297 = vmatprep.subr.mxu1 %v1097_v41  ;;  %v906_v25 = vld [vmem:[%s4020_s5 + $0x70] sm:$0xff]  ;;  %v1007_v39 = vld [vmem:[%s4020_s5 + $0x398] sm:$0xff] }
 0x186   :  { %1227 = vmatpush2.msra.mxu0 %v968_v28  ;;  %1298 = vmatpush2.msra.mxu1 %v1096_v43  ;;  %v902_v28 = vld [vmem:[%s4020_s5 + $0x50] sm:$0xff]  ;;  %v1003_v41 = vld [vmem:[%s4020_s5 + $0x378] sm:$0xff] }
 0x187   :  { %1228 = vmatprep.subr.mxu0 %v965_v30  ;;  %1299 = vmatprep.subr.mxu1 %v1093_v44  ;;  %v898_v30 = vld [vmem:[%s4020_s5 + $0x30] sm:$0xff]  ;;  %v999_v43 = vld [vmem:[%s4020_s5 + $0x358] sm:$0xff] }
 0x188   :  { %1229 = vmatpush2.msra.mxu0 %v964_v32  ;;  %1300 = vmatpush2.msra.mxu1 %v1092_v45  ;;  %v894_v32 = vld [vmem:[%s4020_s5 + $0x10] sm:$0xff]  ;;  %v995_v45 = vld [vmem:[%s4020_s5 + $0x338] sm:$0xff] }
 0x189   :  { %1230 = vmatprep.subr.mxu0 %v961_v34  ;;  %1301 = vmatprep.subr.mxu1 %v1089_v17  ;;  %v1018_v34 = vld [vmem:[%s4020_s5 + $0x3f0] sm:$0xff] }
 0x18a   :  { %1231 = vmatpush2.msra.mxu0 %v960_v36  ;;  %1302 = vmatpush2.msra.mxu1 %v1088_v18  ;;  %v1014_v36 = vld [vmem:[%s4020_s5 + $0x3d0] sm:$0xff]  ;;  %v991_v18 = vld [vmem:[%s4020_s5 + $0x318] sm:$0xff] }
 0x18b   :  { %1232 = vmatprep.subr.mxu0 %v957_v38  ;;  %1303 = vmatprep.subr.mxu1 %v1085_v23  ;;  %v1010_v38 = vld [vmem:[%s4020_s5 + $0x3b0] sm:$0xff] }
 0x18c   :  { %1233 = vmatpush2.msra.mxu0 %v956_v40  ;;  %1304 = vmatpush2.msra.mxu1 %v1084_v26  ;;  %v1006_v40 = vld [vmem:[%s4020_s5 + $0x390] sm:$0xff]  ;;  %v987_v26 = vld [vmem:[%s4020_s5 + $0x2f8] sm:$0xff] }
 0x18d   :  { %1312 = vmatprep.subr.mxu0 %v955_v42  ;;  %1383 = vmatprep.subr.mxu1 %v1083_v46  ;;  %v1002_v42 = vld [vmem:[%s4020_s5 + $0x370] sm:$0xff] }
 0x18e   :  { %v998_v44 = vld [vmem:[%s4020_s5 + $0x350] sm:$0xff] }
 0x18f   :  { %v994_v17 = vld [vmem:[%s4020_s5 + $0x330] sm:$0xff] }
 0x190   :  { %v990_v23 = vld [vmem:[%s4020_s5 + $0x310] sm:$0xff] }
 0x191   :  { %v986_v46 = vld [vmem:[%s4020_s5 + $0x2f0] sm:$0xff] }
 0x1cb   :  { %v674_v50 = vpop.f32.mrf.mxu0  ;;  %v745_v51 = vpop.f32.mrf.mxu1 }
 0x1cc   :  { %v675_v52 = vadd.f32 %v674_v50, %v591_v48  ;;  %v983_v48 = vld [vmem:[%s4020_s5 + $0x2d8] sm:$0xff] }
 0x1cd   :  { %v676_v53 = vpop.f32.mrf.mxu0  ;;  %v747_v55 = vpop.f32.mrf.mxu1  ;;  %v979_v50 = vld [vmem:[%s4020_s5 + $0x2b8] sm:$0xff] }
 0x1ce   :  { %v677_v54 = vadd.f32 %v676_v53, %v595_v49  ;;  %v3421_v57 = vadd.f32 %v745_v51, %v675_v52  ;;  %v982_v49 = vld [vmem:[%s4020_s5 + $0x2d0] sm:$0xff]  ;;  %v975_v52 = vld [vmem:[%s4020_s5 + $0x298] sm:$0xff] }
 0x1cf   :  { %v978_v51 = vld [vmem:[%s4020_s5 + $0x2b0] sm:$0xff] }
 0x1d0   :  { %v748_v56 = vadd.f32 %v747_v55, %v677_v54  ;;  %v974_v53 = vld [vmem:[%s4020_s5 + $0x290] sm:$0xff]  ;;  %v971_v54 = vld [vmem:[%s4020_s5 + $0x278] sm:$0xff] }
 0x1d1   :  { %v970_v55 = vld [vmem:[%s4020_s5 + $0x270] sm:$0xff] }
 0x1d2   :  { %1234 = vmatprep.mubr.f32.mxu0 %v748_v56 }
 0x1d3   :  { %1235 = vmatmul.mubr.f32.vlgmr.msra.gmra.mxu0 %v3421_v57 }
 0x1d4   :  { %1313 = vmatpush1.msra.mxu0 %v954_v58  ;;  %1376 = vmatprep.mubr.f32.mxu0 %v748_v56  ;;  %v599_v56 = vrot.slane %v3415_v47, %v2615_v6  ;;  %v967_v58 = vld [vmem:[%s4020_s5 + $0x258] sm:$0xff] }
 0x1d5   :  { %1314 = vmatprep.subr.mxu0 %v951_v59  ;;  %v603_v59 = vrot.slane %v3415_v47, %v2624_v10  ;;  %v959_v47 = vld [vmem:[%s4020_s5 + $0x218] sm:$0xff] }
 0x1d6   :  { %1315 = vmatpush1.msra.mxu0 %v950_v60  ;;  %v966_v60 = vld [vmem:[%s4020_s5 + $0x250] sm:$0xff] }
 0x1d7   :  { %1316 = vmatprep.subr.mxu0 %v947_v61 }
 0x1d8   :  { %1317 = vmatpush1.msra.mxu0 %v946_v62 }
 0x1d9   :  { %1318 = vmatprep.subr.mxu0 %v943_v63  ;;  %v963_v63 = vld [vmem:[%s4020_s5 + $0x238] sm:$0xff] }
 0x1da   :  { %1319 = vmatpush1.msra.mxu0 %v942_v0  ;;  %v962_v0 = vld [vmem:[%s4020_s5 + $0x230] sm:$0xff] }
 0x1db   :  { %1320 = vmatprep.subr.mxu0 %v939_v1 }
 0x1dc   :  { %1321 = vmatpush1.msra.mxu0 %v938_v2 }
 0x1dd   :  { %1322 = vmatprep.subr.mxu0 %v935_v3 }
 0x1de   :  { %1323 = vmatpush1.msra.mxu0 %v934_v4  ;;  %v958_v4 = vld [vmem:[%s4020_s5 + $0x210] sm:$0xff] }
 0x1df   :  { %1324 = vmatprep.subr.mxu0 %v931_v5 }
 0x1e0   :  { %1325 = vmatpush1.msra.mxu0 %v930_v8 }
 0x1e1   :  { %1326 = vmatprep.subr.mxu0 %v927_v11 }
 0x1e2   :  { %1327 = vmatpush1.msra.mxu0 %v926_v12  ;;  %v1082_v12 = vld [vmem:[%s4020_s5 + $0x5f0] sm:$0xff] }
 0x1e3   :  { %1328 = vmatprep.subr.mxu0 %v923_v13  ;;  %v1079_v13 = vld [vmem:[%s4020_s5 + $0x5d8] sm:$0xff] }
 0x1e4   :  { %1329 = vmatpush1.msra.mxu0 %v922_v14  ;;  %v1078_v14 = vld [vmem:[%s4020_s5 + $0x5d0] sm:$0xff] }
 0x1e5   :  { %1330 = vmatprep.subr.mxu0 %v919_v15  ;;  %v1075_v15 = vld [vmem:[%s4020_s5 + $0x5b8] sm:$0xff] }
 0x1e6   :  { %1331 = vmatpush1.msra.mxu0 %v918_v16  ;;  %v1071_v16 = vld [vmem:[%s4020_s5 + $0x598] sm:$0xff] }
 0x1e7   :  { %1332 = vmatprep.subr.mxu0 %v915_v19  ;;  %v1070_v19 = vld [vmem:[%s4020_s5 + $0x590] sm:$0xff] }
 0x1e8   :  { %1333 = vmatpush1.msra.mxu0 %v914_v20  ;;  %v1067_v20 = vld [vmem:[%s4020_s5 + $0x578] sm:$0xff] }
 0x1e9   :  { %1334 = vmatprep.subr.mxu0 %v911_v21  ;;  %v1066_v21 = vld [vmem:[%s4020_s5 + $0x570] sm:$0xff] }
 0x1ea   :  { %1335 = vmatpush1.msra.mxu0 %v910_v22  ;;  %v1063_v22 = vld [vmem:[%s4020_s5 + $0x558] sm:$0xff] }
 0x1eb   :  { %1336 = vmatprep.subr.mxu0 %v907_v24  ;;  %v1062_v24 = vld [vmem:[%s4020_s5 + $0x550] sm:$0xff] }
 0x1ec   :  { %1337 = vmatpush1.msra.mxu0 %v906_v25  ;;  %v1059_v25 = vld [vmem:[%s4020_s5 + $0x538] sm:$0xff] }
 0x1ed   :  { %1338 = vmatprep.subr.mxu0 %v903_v27  ;;  %v1058_v27 = vld [vmem:[%s4020_s5 + $0x530] sm:$0xff] }
 0x1ee   :  { %1339 = vmatpush1.msra.mxu0 %v902_v28  ;;  %v1055_v28 = vld [vmem:[%s4020_s5 + $0x518] sm:$0xff] }
 0x1ef   :  { %1340 = vmatprep.subr.mxu0 %v899_v29  ;;  %v1054_v29 = vld [vmem:[%s4020_s5 + $0x510] sm:$0xff] }
 0x1f0   :  { %1341 = vmatpush1.msra.mxu0 %v898_v30  ;;  %v1051_v30 = vld [vmem:[%s4020_s5 + $0x4f8] sm:$0xff] }
 0x1f1   :  { %1342 = vmatprep.subr.mxu0 %v895_v31  ;;  %v1050_v31 = vld [vmem:[%s4020_s5 + $0x4f0] sm:$0xff] }
 0x1f2   :  { %1343 = vmatpush1.msra.mxu0 %v894_v32  ;;  %v1047_v32 = vld [vmem:[%s4020_s5 + $0x4d8] sm:$0xff] }
 0x1f3   :  { %1344 = vmatprep.subr.mxu0 %v1019_v33  ;;  %v1046_v33 = vld [vmem:[%s4020_s5 + $0x4d0] sm:$0xff] }
 0x1f4   :  { %1345 = vmatpush2.msra.mxu0 %v1018_v34  ;;  %v1043_v34 = vld [vmem:[%s4020_s5 + $0x4b8] sm:$0xff] }
 0x1f5   :  { %1346 = vmatprep.subr.mxu0 %v1015_v35  ;;  %v1042_v35 = vld [vmem:[%s4020_s5 + $0x4b0] sm:$0xff] }
 0x1f6   :  { %1347 = vmatpush2.msra.mxu0 %v1014_v36  ;;  %v1039_v36 = vld [vmem:[%s4020_s5 + $0x498] sm:$0xff] }
 0x1f7   :  { %1348 = vmatprep.subr.mxu0 %v1011_v37  ;;  %v1038_v37 = vld [vmem:[%s4020_s5 + $0x490] sm:$0xff] }
 0x1f8   :  { %1349 = vmatpush2.msra.mxu0 %v1010_v38  ;;  %v1035_v38 = vld [vmem:[%s4020_s5 + $0x478] sm:$0xff] }
 0x1f9   :  { %1350 = vmatprep.subr.mxu0 %v1007_v39  ;;  %v1034_v39 = vld [vmem:[%s4020_s5 + $0x470] sm:$0xff] }
 0x1fa   :  { %1351 = vmatpush2.msra.mxu0 %v1006_v40  ;;  %v1031_v40 = vld [vmem:[%s4020_s5 + $0x458] sm:$0xff] }
 0x1fb   :  { %1352 = vmatprep.subr.mxu0 %v1003_v41  ;;  %v1030_v41 = vld [vmem:[%s4020_s5 + $0x450] sm:$0xff] }
 0x1fc   :  { %1353 = vmatpush2.msra.mxu0 %v1002_v42  ;;  %v1027_v42 = vld [vmem:[%s4020_s5 + $0x438] sm:$0xff] }
 0x1fd   :  { %1354 = vmatprep.subr.mxu0 %v999_v43  ;;  %v1026_v43 = vld [vmem:[%s4020_s5 + $0x430] sm:$0xff] }
 0x1fe   :  { %1355 = vmatpush2.msra.mxu0 %v998_v44  ;;  %v1023_v44 = vld [vmem:[%s4020_s5 + $0x418] sm:$0xff] }
 0x1ff   :  { %1356 = vmatprep.subr.mxu0 %v995_v45  ;;  %v1022_v45 = vld [vmem:[%s4020_s5 + $0x410] sm:$0xff] }
 0x200   :  { %1357 = vmatpush2.msra.mxu0 %v994_v17  ;;  %v1147_v17 = vld [vmem:[%s4020_s5 + $0x7f8] sm:$0xff] }
 0x201   :  { %1358 = vmatprep.subr.mxu0 %v991_v18  ;;  %v1146_v18 = vld [vmem:[%s4020_s5 + $0x7f0] sm:$0xff] }
 0x202   :  { %1359 = vmatpush2.msra.mxu0 %v990_v23  ;;  %v1143_v23 = vld [vmem:[%s4020_s5 + $0x7d8] sm:$0xff] }
 0x203   :  { %1360 = vmatprep.subr.mxu0 %v987_v26  ;;  %v1142_v26 = vld [vmem:[%s4020_s5 + $0x7d0] sm:$0xff] }
 0x204   :  { %1361 = vmatpush2.msra.mxu0 %v986_v46  ;;  %v1139_v46 = vld [vmem:[%s4020_s5 + $0x7b8] sm:$0xff] }
 0x205   :  { %1362 = vmatprep.subr.mxu0 %v983_v48  ;;  %v1138_v48 = vld [vmem:[%s4020_s5 + $0x7b0] sm:$0xff] }
 0x206   :  { %1363 = vmatpush2.msra.mxu0 %v982_v49  ;;  %v1135_v49 = vld [vmem:[%s4020_s5 + $0x798] sm:$0xff] }
 0x207   :  { %1364 = vmatprep.subr.mxu0 %v979_v50  ;;  %v1134_v50 = vld [vmem:[%s4020_s5 + $0x790] sm:$0xff] }
 0x208   :  { %1365 = vmatpush2.msra.mxu0 %v978_v51  ;;  %v1131_v51 = vld [vmem:[%s4020_s5 + $0x778] sm:$0xff] }
 0x209   :  { %1366 = vmatprep.subr.mxu0 %v975_v52  ;;  %v1130_v52 = vld [vmem:[%s4020_s5 + $0x770] sm:$0xff] }
 0x20a   :  { %1367 = vmatpush2.msra.mxu0 %v974_v53  ;;  %v1127_v53 = vld [vmem:[%s4020_s5 + $0x758] sm:$0xff] }
 0x20b   :  { %1368 = vmatprep.subr.mxu0 %v971_v54  ;;  %v1126_v54 = vld [vmem:[%s4020_s5 + $0x750] sm:$0xff] }
 0x20c   :  { %v816_v61 = vpop.f32.mrf.mxu0  ;;  %v887_v62 = vpop.f32.mrf.mxu1  ;;  %1369 = vmatpush2.msra.mxu0 %v970_v55  ;;  %v1123_v55 = vld [vmem:[%s4020_s5 + $0x738] sm:$0xff] }
 0x20d   :  { %1370 = vmatprep.subr.mxu0 %v967_v58  ;;  %v817_v1 = vadd.f32 %v816_v61, %v599_v56  ;;  %v1122_v56 = vld [vmem:[%s4020_s5 + $0x730] sm:$0xff]  ;;  %v1119_v58 = vld [vmem:[%s4020_s5 + $0x718] sm:$0xff] }
 0x20e   :  { %v818_v2 = vpop.f32.mrf.mxu0  ;;  %1371 = vmatpush2.msra.mxu0 %v966_v60  ;;  %v889_v5 = vpop.f32.mrf.mxu1  ;;  %v1115_v60 = vld [vmem:[%s4020_s5 + $0x6f8] sm:$0xff]  ;;  %v1114_v61 = vld [vmem:[%s4020_s5 + $0x6f0] sm:$0xff] }
 0x20f   :  { %v819_v3 = vadd.f32 %v818_v2, %v603_v59  ;;  %1372 = vmatprep.subr.mxu0 %v963_v63  ;;  %v3617_v11 = vadd.f32 %v887_v62, %v817_v1  ;;  %v1118_v59 = vld [vmem:[%s4020_s5 + $0x710] sm:$0xff]  ;;  %v1111_v62 = vld [vmem:[%s4020_s5 + $0x6d8] sm:$0xff] }
 0x210   :  { %1373 = vmatpush2.msra.mxu0 %v962_v0  ;;  %v1110_v63 = vld [vmem:[%s4020_s5 + $0x6d0] sm:$0xff]  ;;  %v1107_v0 = vld [vmem:[%s4020_s5 + $0x6b8] sm:$0xff] }
 0x211   :  { %v890_v8 = vadd.f32 %v889_v5, %v819_v3  ;;  %1374 = vmatprep.subr.mxu0 %v959_v47  ;;  %v1106_v1 = vld [vmem:[%s4020_s5 + $0x6b0] sm:$0xff]  ;;  %v1103_v2 = vld [vmem:[%s4020_s5 + $0x698] sm:$0xff] }
 0x212   :  { %1375 = vmatpush2.msra.mxu0 %v958_v4  ;;  %v1102_v47 = vld [vmem:[%s4020_s5 + $0x690] sm:$0xff]  ;;  %v1099_v3 = vld [vmem:[%s4020_s5 + $0x678] sm:$0xff] }
 0x213   :  { %1305 = vmatprep.mubr.f32.mxu1 %v890_v8  ;;  %1377 = vmatmul.mubr.f32.vlgmr.msra.gmra.mxu0 %v3421_v57  ;;  %v1074_v57 = vld [vmem:[%s4020_s5 + $0x5b0] sm:$0xff]  ;;  %v1095_v5 = vld [vmem:[%s4020_s5 + $0x658] sm:$0xff] }
 0x214   :  { %1306 = vmatmul.mubr.f32.vlgmr.msra.gmra.mxu1 %v3617_v11  ;;  %v1098_v4 = vld [vmem:[%s4020_s5 + $0x670] sm:$0xff] }
 0x215   :  { %1384 = vmatpush1.msra.mxu1 %v1082_v12  ;;  %1447 = vmatprep.mubr.f32.mxu1 %v890_v8  ;;  %v1094_v8 = vld [vmem:[%s4020_s5 + $0x650] sm:$0xff]  ;;  %v1091_v12 = vld [vmem:[%s4020_s5 + $0x638] sm:$0xff] }
 0x216   :  { %1385 = vmatprep.subr.mxu1 %v1079_v13  ;;  %v1090_v13 = vld [vmem:[%s4020_s5 + $0x630] sm:$0xff] }
 0x217   :  { %1386 = vmatpush1.msra.mxu1 %v1078_v14  ;;  %v1087_v14 = vld [vmem:[%s4020_s5 + $0x618] sm:$0xff] }
 0x218   :  { %1387 = vmatprep.subr.mxu1 %v1075_v15  ;;  %v1086_v15 = vld [vmem:[%s4020_s5 + $0x610] sm:$0xff] }
 0x219   :  { %1388 = vmatpush1.msra.mxu1 %v1074_v57  ;;  %v1509_v57 = vld [vmem:[%s4022_s7 + $0xf8] sm:$0xff] }
 0x21a   :  { %1389 = vmatprep.subr.mxu1 %v1071_v16  ;;  %1699 = vmatprep.subr.mxu0 %v1509_v57  ;;  %v1493_v16 = vld [vmem:[%s4022_s7 + $0x78] sm:$0xff]  ;;  %v1527_v57 = vld [vmem:[%s4022_s7 + $0x188] sm:$0xff] }
 0x21b   :  { %1390 = vmatpush1.msra.mxu1 %v1070_v19  ;;  %1700 = vmatpush3.msra.mxu0 %v1493_v16  ;;  %v1508_v19 = vld [vmem:[%s4022_s7 + $0xf0] sm:$0xff]  ;;  %v1511_v16 = vld [vmem:[%s4022_s7 + $0x108] sm:$0xff] }
 0x21c   :  { %1391 = vmatprep.subr.mxu1 %v1067_v20  ;;  %1701 = vmatprep.subr.mxu0 %v1508_v19  ;;  %v1492_v20 = vld [vmem:[%s4022_s7 + $0x70] sm:$0xff]  ;;  %v1526_v19 = vld [vmem:[%s4022_s7 + $0x180] sm:$0xff] }
 0x21d   :  { %1392 = vmatpush1.msra.mxu1 %v1066_v21  ;;  %1702 = vmatpush3.msra.mxu0 %v1492_v20  ;;  %v1491_v21 = vld [vmem:[%s4022_s7 + $0x68] sm:$0xff]  ;;  %v1510_v20 = vld [vmem:[%s4022_s7 + $0x100] sm:$0xff] }
 0x21e   :  { %1393 = vmatprep.subr.mxu1 %v1063_v22  ;;  %v1506_v22 = vld [vmem:[%s4022_s7 + $0xe0] sm:$0xff] }
 0x21f   :  { %1394 = vmatpush1.msra.mxu1 %v1062_v24  ;;  %v1490_v24 = vld [vmem:[%s4022_s7 + $0x60] sm:$0xff] }
 0x220   :  { %1395 = vmatprep.subr.mxu1 %v1059_v25  ;;  %v1505_v25 = vld [vmem:[%s4022_s7 + $0xd8] sm:$0xff] }
 0x221   :  { %1396 = vmatpush1.msra.mxu1 %v1058_v27  ;;  %v1489_v27 = vld [vmem:[%s4022_s7 + $0x58] sm:$0xff] }
 0x222   :  { %1397 = vmatprep.subr.mxu1 %v1055_v28  ;;  %v1504_v28 = vld [vmem:[%s4022_s7 + $0xd0] sm:$0xff] }
 0x223   :  { %1398 = vmatpush1.msra.mxu1 %v1054_v29  ;;  %v1488_v29 = vld [vmem:[%s4022_s7 + $0x50] sm:$0xff] }
 0x224   :  { %1399 = vmatprep.subr.mxu1 %v1051_v30  ;;  %v1503_v30 = vld [vmem:[%s4022_s7 + $0xc8] sm:$0xff] }
 0x225   :  { %1400 = vmatpush1.msra.mxu1 %v1050_v31  ;;  %v1487_v31 = vld [vmem:[%s4022_s7 + $0x48] sm:$0xff] }
 0x226   :  { %1401 = vmatprep.subr.mxu1 %v1047_v32  ;;  %v1502_v32 = vld [vmem:[%s4022_s7 + $0xc0] sm:$0xff] }
 0x227   :  { %1402 = vmatpush1.msra.mxu1 %v1046_v33  ;;  %v1486_v33 = vld [vmem:[%s4022_s7 + $0x40] sm:$0xff] }
 0x228   :  { %1403 = vmatprep.subr.mxu1 %v1043_v34  ;;  %v1501_v34 = vld [vmem:[%s4022_s7 + $0xb8] sm:$0xff] }
 0x229   :  { %1404 = vmatpush1.msra.mxu1 %v1042_v35  ;;  %v1485_v35 = vld [vmem:[%s4022_s7 + $0x38] sm:$0xff] }
 0x22a   :  { %1405 = vmatprep.subr.mxu1 %v1039_v36  ;;  %v1500_v36 = vld [vmem:[%s4022_s7 + $0xb0] sm:$0xff] }
 0x22b   :  { %1406 = vmatpush1.msra.mxu1 %v1038_v37  ;;  %v1484_v37 = vld [vmem:[%s4022_s7 + $0x30] sm:$0xff] }
 0x22c   :  { %1407 = vmatprep.subr.mxu1 %v1035_v38  ;;  %v1499_v38 = vld [vmem:[%s4022_s7 + $0xa8] sm:$0xff] }
 0x22d   :  { %1408 = vmatpush1.msra.mxu1 %v1034_v39  ;;  %v1483_v39 = vld [vmem:[%s4022_s7 + $0x28] sm:$0xff] }
 0x22e   :  { %1409 = vmatprep.subr.mxu1 %v1031_v40  ;;  %v1498_v40 = vld [vmem:[%s4022_s7 + $0xa0] sm:$0xff] }
 0x22f   :  { %1410 = vmatpush1.msra.mxu1 %v1030_v41  ;;  %v1482_v41 = vld [vmem:[%s4022_s7 + $0x20] sm:$0xff] }
 0x230   :  { %1411 = vmatprep.subr.mxu1 %v1027_v42  ;;  %v1497_v42 = vld [vmem:[%s4022_s7 + $0x98] sm:$0xff] }
 0x231   :  { %1412 = vmatpush1.msra.mxu1 %v1026_v43  ;;  %v1481_v43 = vld [vmem:[%s4022_s7 + $0x18] sm:$0xff] }
 0x232   :  { %1413 = vmatprep.subr.mxu1 %v1023_v44  ;;  %v1496_v44 = vld [vmem:[%s4022_s7 + $0x90] sm:$0xff] }
 0x233   :  { %1414 = vmatpush1.msra.mxu1 %v1022_v45  ;;  %v1480_v45 = vld [vmem:[%s4022_s7 + $0x10] sm:$0xff] }
 0x234   :  { %1415 = vmatprep.subr.mxu1 %v1147_v17  ;;  %v1495_v17 = vld [vmem:[%s4022_s7 + $0x88] sm:$0xff] }
 0x235   :  { %1416 = vmatpush2.msra.mxu1 %v1146_v18  ;;  %v1479_v18 = vld [vmem:[%s4022_s7 + $0x8] sm:$0xff] }
 0x236   :  { %1417 = vmatprep.subr.mxu1 %v1143_v23  ;;  %v1494_v23 = vld [vmem:[%s4022_s7 + $0x80] sm:$0xff] }
 0x237   :  { %1418 = vmatpush2.msra.mxu1 %v1142_v26  ;;  %v1478_v26 = vld [vmem:[%s4022_s7] sm:$0xff] }
 0x238   :  { %1419 = vmatprep.subr.mxu1 %v1139_v46  ;;  %v1541_v46 = vld [vmem:[%s4022_s7 + $0x1f8] sm:$0xff] }
 0x239   :  { %1420 = vmatpush2.msra.mxu1 %v1138_v48  ;;  %v1525_v48 = vld [vmem:[%s4022_s7 + $0x178] sm:$0xff] }
 0x23a   :  { %1421 = vmatprep.subr.mxu1 %v1135_v49  ;;  %v1540_v49 = vld [vmem:[%s4022_s7 + $0x1f0] sm:$0xff] }
 0x23b   :  { %1422 = vmatpush2.msra.mxu1 %v1134_v50  ;;  %v1524_v50 = vld [vmem:[%s4022_s7 + $0x170] sm:$0xff] }
 0x23c   :  { %1423 = vmatprep.subr.mxu1 %v1131_v51  ;;  %v1539_v51 = vld [vmem:[%s4022_s7 + $0x1e8] sm:$0xff] }
 0x23d   :  { %1424 = vmatpush2.msra.mxu1 %v1130_v52  ;;  %v1523_v52 = vld [vmem:[%s4022_s7 + $0x168] sm:$0xff] }
 0x23e   :  { %1425 = vmatprep.subr.mxu1 %v1127_v53  ;;  %v1538_v53 = vld [vmem:[%s4022_s7 + $0x1e0] sm:$0xff] }
 0x23f   :  { %1426 = vmatpush2.msra.mxu1 %v1126_v54  ;;  %v1522_v54 = vld [vmem:[%s4022_s7 + $0x160] sm:$0xff] }
 0x240   :  { %1427 = vmatprep.subr.mxu1 %v1123_v55  ;;  %v1537_v55 = vld [vmem:[%s4022_s7 + $0x1d8] sm:$0xff] }
 0x241   :  { %1428 = vmatpush2.msra.mxu1 %v1122_v56  ;;  %v1521_v56 = vld [vmem:[%s4022_s7 + $0x158] sm:$0xff] }
 0x242   :  { %1429 = vmatprep.subr.mxu1 %v1119_v58  ;;  %v1536_v58 = vld [vmem:[%s4022_s7 + $0x1d0] sm:$0xff] }
 0x243   :  { %1430 = vmatpush2.msra.mxu1 %v1118_v59  ;;  %v1520_v59 = vld [vmem:[%s4022_s7 + $0x150] sm:$0xff] }
 0x244   :  { %1431 = vmatprep.subr.mxu1 %v1115_v60  ;;  %v1535_v60 = vld [vmem:[%s4022_s7 + $0x1c8] sm:$0xff] }
 0x245   :  { %1432 = vmatpush2.msra.mxu1 %v1114_v61  ;;  %v1519_v61 = vld [vmem:[%s4022_s7 + $0x148] sm:$0xff] }
 0x246   :  { %1433 = vmatprep.subr.mxu1 %v1111_v62  ;;  %v1534_v62 = vld [vmem:[%s4022_s7 + $0x1c0] sm:$0xff] }
 0x247   :  { %1434 = vmatpush2.msra.mxu1 %v1110_v63  ;;  %v1518_v63 = vld [vmem:[%s4022_s7 + $0x140] sm:$0xff] }
 0x248   :  { %1435 = vmatprep.subr.mxu1 %v1107_v0  ;;  %v1533_v0 = vld [vmem:[%s4022_s7 + $0x1b8] sm:$0xff] }
 0x249   :  { %1436 = vmatpush2.msra.mxu1 %v1106_v1  ;;  %v1517_v1 = vld [vmem:[%s4022_s7 + $0x138] sm:$0xff] }
 0x24a   :  { %1437 = vmatprep.subr.mxu1 %v1103_v2  ;;  %v1532_v2 = vld [vmem:[%s4022_s7 + $0x1b0] sm:$0xff] }
 0x24b   :  { %1438 = vmatpush2.msra.mxu1 %v1102_v47  ;;  %v1516_v47 = vld [vmem:[%s4022_s7 + $0x130] sm:$0xff] }
 0x24c   :  { %1439 = vmatprep.subr.mxu1 %v1099_v3  ;;  %v1531_v3 = vld [vmem:[%s4022_s7 + $0x1a8] sm:$0xff] }
 0x24d   :  { %1440 = vmatpush2.msra.mxu1 %v1098_v4  ;;  %v1515_v4 = vld [vmem:[%s4022_s7 + $0x128] sm:$0xff] }
 0x24e   :  { %1441 = vmatprep.subr.mxu1 %v1095_v5  ;;  %v1530_v5 = vld [vmem:[%s4022_s7 + $0x1a0] sm:$0xff] }
 0x24f   :  { %1442 = vmatpush2.msra.mxu1 %v1094_v8  ;;  %v1514_v8 = vld [vmem:[%s4022_s7 + $0x120] sm:$0xff] }
 0x250   :  { %1443 = vmatprep.subr.mxu1 %v1091_v12  ;;  %v1529_v12 = vld [vmem:[%s4022_s7 + $0x198] sm:$0xff] }
 0x251   :  { %1444 = vmatpush2.msra.mxu1 %v1090_v13  ;;  %v1513_v13 = vld [vmem:[%s4022_s7 + $0x118] sm:$0xff] }
 0x252   :  { %1445 = vmatprep.subr.mxu1 %v1087_v14  ;;  %v1528_v14 = vld [vmem:[%s4022_s7 + $0x190] sm:$0xff] }
 0x253   :  { %1446 = vmatpush2.msra.mxu1 %v1086_v15  ;;  %v1512_v15 = vld [vmem:[%s4022_s7 + $0x110] sm:$0xff] }
 0x254   :  { %1448 = vmatmul.mubr.f32.vlgmr.msra.gmra.mxu1 %v3617_v11  ;;  %v1507_v11 = vld [vmem:[%s4022_s7 + $0xe8] sm:$0xff]  ;;  %1734 = vmatprep.subr.mxu1 %v1541_v46 }
 0x255   :  { %1703 = vmatprep.subr.mxu0 %v1507_v11  ;;  %1735 = vmatpush3.msra.mxu1 %v1525_v48  ;;  %v1148_v11 = vld [vmem:[%s4023_s6] sm:$0xf] }
 0x256   :  { %1704 = vmatpush3.msra.mxu0 %v1491_v21  ;;  %1736 = vmatprep.subr.mxu1 %v1540_v49 }
 0x257   :  { %1705 = vmatprep.subr.mxu0 %v1506_v22  ;;  %1737 = vmatpush3.msra.mxu1 %v1524_v50  ;;  %v1153_v22 = vrot.slane %v1148_v11, %v2617_v7 }
 0x258   :  { %1706 = vmatpush3.msra.mxu0 %v1490_v24  ;;  %1738 = vmatprep.subr.mxu1 %v1539_v51  ;;  %v1157_v24 = vrot.slane %v1148_v11, %v2622_v9 }
 0x259   :  { %1707 = vmatprep.subr.mxu0 %v1505_v25  ;;  %1739 = vmatpush3.msra.mxu1 %v1523_v52 }
 0x25a   :  { %1708 = vmatpush3.msra.mxu0 %v1489_v27  ;;  %1740 = vmatprep.subr.mxu1 %v1538_v53 }
 0x25b   :  { %1709 = vmatprep.subr.mxu0 %v1504_v28  ;;  %1741 = vmatpush3.msra.mxu1 %v1522_v54 }
 0x25c   :  { %1710 = vmatpush3.msra.mxu0 %v1488_v29  ;;  %1742 = vmatprep.subr.mxu1 %v1537_v55  ;;  %v1698_v55 = vld [vmem:[%s4024_s8] ss:$0 sm:$0xff] }
 0x25d   :  { %1711 = vmatprep.subr.mxu0 %v1503_v30  ;;  %1743 = vmatpush3.msra.mxu1 %v1521_v56 }
 0x25e   :  { %1712 = vmatpush3.msra.mxu0 %v1487_v31  ;;  %1744 = vmatprep.subr.mxu1 %v1536_v58 }
 0x25f   :  { %1713 = vmatprep.subr.mxu0 %v1502_v32  ;;  %1745 = vmatpush3.msra.mxu1 %v1520_v59 }
 0x260   :  { %1714 = vmatpush3.msra.mxu0 %v1486_v33  ;;  %1746 = vmatprep.subr.mxu1 %v1535_v60 }
 0x261   :  { %1715 = vmatprep.subr.mxu0 %v1501_v34  ;;  %1747 = vmatpush3.msra.mxu1 %v1519_v61 }
 0x262   :  { %1716 = vmatpush3.msra.mxu0 %v1485_v35  ;;  %1748 = vmatprep.subr.mxu1 %v1534_v62 }
 0x263   :  { %1717 = vmatprep.subr.mxu0 %v1500_v36  ;;  %1749 = vmatpush3.msra.mxu1 %v1518_v63 }
 0x264   :  { %1718 = vmatpush3.msra.mxu0 %v1484_v37  ;;  %1750 = vmatprep.subr.mxu1 %v1533_v0 }
 0x265   :  { %1719 = vmatprep.subr.mxu0 %v1499_v38  ;;  %1751 = vmatpush3.msra.mxu1 %v1517_v1 }
 0x266   :  { %1720 = vmatpush3.msra.mxu0 %v1483_v39  ;;  %1752 = vmatprep.subr.mxu1 %v1532_v2 }
 0x267   :  { %1721 = vmatprep.subr.mxu0 %v1498_v40  ;;  %1753 = vmatpush3.msra.mxu1 %v1516_v47  ;;  %v1161_v40 = vrot.slane %v1148_v11, %v2615_v6 }
 0x268   :  { %1722 = vmatpush3.msra.mxu0 %v1482_v41  ;;  %1754 = vmatprep.subr.mxu1 %v1531_v3  ;;  %v1165_v41 = vrot.slane %v1148_v11, %v2624_v10 }
 0x269   :  { %1723 = vmatprep.subr.mxu0 %v1497_v42  ;;  %1755 = vmatpush3.msra.mxu1 %v1515_v4 }
 0x26a   :  { %1724 = vmatpush3.msra.mxu0 %v1481_v43  ;;  %1756 = vmatprep.subr.mxu1 %v1530_v5 }
 0x26b   :  { %1725 = vmatprep.subr.mxu0 %v1496_v44  ;;  %1757 = vmatpush3.msra.mxu1 %v1514_v8 }
 0x26c   :  { %1726 = vmatpush3.msra.mxu0 %v1480_v45  ;;  %1758 = vmatprep.subr.mxu1 %v1529_v12 }
 0x26d   :  { %1727 = vmatprep.subr.mxu0 %v1495_v17  ;;  %1759 = vmatpush3.msra.mxu1 %v1513_v13 }
 0x26e   :  { %1728 = vmatpush3.msra.mxu0 %v1479_v18  ;;  %1760 = vmatprep.subr.mxu1 %v1528_v14 }
 0x26f   :  { %1729 = vmatprep.subr.mxu0 %v1494_v23  ;;  %1761 = vmatpush3.msra.mxu1 %v1512_v15 }
 0x270   :  { %1730 = vmatpush3.msra.mxu0 %v1478_v26  ;;  %1762 = vmatprep.subr.mxu1 %v1527_v57 }
 0x271   :  { %1763 = vmatpush3.msra.mxu1 %v1511_v16 }
 0x272   :  { %1764 = vmatprep.subr.mxu1 %v1526_v19 }
 0x273   :  { %1765 = vmatpush3.msra.mxu1 %v1510_v20 }
 0x293   :  { %v1236_v21 = vpop.f32.mrf.mxu0 }
 0x294   :  { %v1237_v27 = vadd.f32 %v1236_v21, %v1153_v22 }
 0x295   :  { %v1238_v25 = vpop.f32.mrf.mxu0 }
 0x296   :  { %v1239_v29 = vadd.f32 %v1238_v25, %v1157_v24 }
 0x2d3   :  { %v1378_v9 = vpop.f32.mrf.mxu0 }
 0x2d4   :  { %v1307_v28 = vpop.f32.mrf.mxu1  ;;  %v1379_v43 = vadd.f32 %v1378_v9, %v1161_v40 }
 0x2d5   :  { %v1308_v30 = vadd.f32 %v1307_v28, %v1237_v27  ;;  %v1380_v42 = vpop.f32.mrf.mxu0 }
 0x2d6   :  { %v1309_v31 = vpop.f32.mrf.mxu1  ;;  %v1381_v45 = vadd.f32 %v1380_v42, %v1165_v41 }
 0x2d7   :  { %v1694_v32 = vmul.f32 -1.442695, %v1308_v30  ;;  %v1310_v33 = vadd.f32 %v1309_v31, %v1239_v29 }
 0x2d9   :  { %1769 = vpow2.f32 %v1694_v32  ;;  %v1695_v34 = vmul.f32 -1.442695, %v1310_v33 }
 0x2db   :  { %1771 = vpow2.f32 %v1695_v34 }
 0x2e6   :  { %v1770_v35 = vpop.eup %1769 }
 0x2e7   :  { %v1466_v37 = vadd.f32 1.0, %v1770_v35 }
 0x2e8   :  { %v1772_v36 = vpop.eup %1771 }
 0x2e9   :  { %v1467_v38 = vadd.f32 1.0, %v1772_v36 }
 0x2eb   :  { %1773 = vrcp.f32 %v1467_v38 }
 0x2ec   :  { %1775 = vrcp.f32 %v1466_v37 }
 0x2f8   :  { %v1774_v7 = vpop.eup %1773 }
 0x2f9   :  { %v1776_v39 = vpop.eup %1775  ;;  %1613 = vmatprep.mubr.f32.mxu0 %v1774_v7 }
 0x2fa   :  { %1614 = vmatmul.mubr.f32.vlgmr.msra.gmra.mxu0 %v1776_v39 }
 0x314   :  { %v1449_v44 = vpop.f32.mrf.mxu1 }
 0x315   :  { %v1450_v17 = vadd.f32 %v1449_v44, %v1379_v43 }
 0x316   :  { %v1451_v18 = vpop.f32.mrf.mxu1 }
 0x317   :  { %v1696_v23 = vmul.f32 -1.442695, %v1450_v17  ;;  %v1452_v26 = vadd.f32 %v1451_v18, %v1381_v45 }
 0x319   :  { %1777 = vpow2.f32 %v1696_v23  ;;  %v1697_v46 = vmul.f32 -1.442695, %v1452_v26 }
 0x31b   :  { %1779 = vpow2.f32 %v1697_v46 }
 0x326   :  { %v1778_v48 = vpop.eup %1777 }
 0x327   :  { %v1468_v50 = vadd.f32 1.0, %v1778_v48 }
 0x328   :  { %v1780_v49 = vpop.eup %1779 }
 0x329   :  { %v1469_v51 = vadd.f32 1.0, %v1780_v49 }
 0x32b   :  { %1781 = vrcp.f32 %v1469_v51 }
 0x32c   :  { %1783 = vrcp.f32 %v1468_v50 }
 0x338   :  { %v1782_v6 = vpop.eup %1781 }
 0x339   :  { %v1784_v52 = vpop.eup %1783  ;;  %1683 = vmatprep.mubr.f32.mxu1 %v1782_v6 }
 0x33a   :  { %1684 = vmatmul.mubr.f32.vlgmr.msra.gmra.mxu1 %v1784_v52 }
 0x3ba   :  { %v1731_v10 = vpop.f32.mrf.mxu0 }
 0x3bc   :  { %v1732_v53 = vpop.f32.mrf.mxu0 }
 0x3bd   :  { %v1733_v54 = vadd.f32 %v1732_v53, %v1731_v10 }
 0x3bf   :  { %v1616_v59 = vadd.f32 %v1733_v54, %v1698_v55 }
 0x3fa   :  { %v1766_v56 = vpop.f32.mrf.mxu1 }
 0x3fc   :  { %v1767_v58 = vpop.f32.mrf.mxu1 }
 0x3fd   :  { %v1768_v60 = vadd.f32 %v1767_v58, %v1766_v56 }
 0x3ff   :  { %v1686_v61 = vadd.f32 %v1768_v60, %v1616_v59 }
 0x401   :  { %1689 = vst [vmem:[%s4025_s9] sm:$0xff] %v1686_v61 }

</bundles_post_ra>
